<compile_context>
chip_gen: v7x
topology: tpu7x:2x2x1
jax: 0.10.0
libtpu: 0.0.40
codegen_flags: <defaults>
</compile_context>

<pallas_src>
import functools

import jax
import jax.numpy as jnp
from jax.experimental import pallas as pl
from jax.experimental.pallas import tpu as pltpu


def _hardswish(x):
    return x * jnp.clip(x + 3.0, 0.0, 6.0) * (1.0 / 6.0)


# ------------------------------ fused kernel ------------------------------

def fused_scene_kernel(
        x_ref,        # (1, C, P+4E) uint8   flattened, zero-flanked padded image
        scale_ref,    # (C, P+4E)    f32     inv_std/255 at interior, 0 elsewhere
        offset_ref,   # (C, P+4E)    f32     -mean*inv_std at interior, 0 elsewhere
        mask_ref,     # (1, P+2E)    f32     1 at interior, 0 elsewhere
        w_stem_ref,   # (9, C1, C)   bf16    stem 3x3 taps (transposed)
        b_stem_ref,   # (C1, 1)      f32
        w_dw_ref,     # (9, C1, 1)   f32     depthwise 3x3 taps
        b_dw_ref,     # (C1, 1)      f32
        w_pw_ref,     # (C2, C1)     bf16    pointwise 1x1 (transposed)
        b_pw_ref,     # (C2, 1)      f32
        pool_ref,     # (1, P)       f32     interior mask / (H*W)
        w_fc1_ref,    # (C2, H1)     f32
        b_fc1_ref,    # (1, H1)      f32
        w_fc2_ref,    # (H1, OUT_PAD) f32    zero-padded to lane-dense width
        b_fc2_ref,    # (1, OUT_PAD) f32
        o_ref,        # (1, 1, OUT_PAD) f32
        *, taps, ext):
    p_stem = mask_ref.shape[-1]     # P + 2E  (width of the stem output)
    p_img = pool_ref.shape[-1]      # P = Hp*Wp (padded image positions)

    # x.float()/255 + Normalize(mean, std) as a per-position affine; the affine
    # is zero at padded / flank positions, emulating the convs' zero padding.
    x = x_ref[0].astype(jnp.int32).astype(jnp.float32)                 # (C, P+4E)
    z0 = (x * scale_ref[...] + offset_ref[...]).astype(jnp.bfloat16)

    # stem 3x3 conv (C -> C1): 9 shifted lane slices x bf16 MXU matmuls, f32 acc
    acc = None
    for k, d in enumerate(taps):
        a = z0[:, ext + d: ext + d + p_stem]                           # (C, P+2E)
        t = jnp.dot(w_stem_ref[k], a, preferred_element_type=jnp.float32)
        acc = t if acc is None else acc + t
    z1 = _hardswish(acc + b_stem_ref[...]) * mask_ref[...]             # (C1, P+2E)

    # depthwise 3x3 conv: per-channel MAC on the VPU (spatial on lanes)
    dacc = None
    for k, d in enumerate(taps):
        t = z1[:, ext + d: ext + d + p_img] * w_dw_ref[k]              # (C1, P)
        dacc = t if dacc is None else dacc + t
    z2 = _hardswish(dacc + b_dw_ref[...])                              # (C1, P)

    # pointwise 1x1 conv (C1 -> C2), bf16 MXU, f32 accumulate
    z3 = _hardswish(
        jnp.dot(w_pw_ref[...], z2.astype(jnp.bfloat16),
                preferred_element_type=jnp.float32) + b_pw_ref[...])   # (C2, P)

    # global average pool (interior mask + 1/HW folded into pool_ref) + head
    pooled = jnp.dot(pool_ref[...], z3.T,
                     preferred_element_type=jnp.float32)               # (1, C2)
    h = _hardswish(jnp.dot(pooled, w_fc1_ref[...],
                           preferred_element_type=jnp.float32) + b_fc1_ref[...])
    o_ref[0] = (jnp.dot(h, w_fc2_ref[...],
                        preferred_element_type=jnp.float32) + b_fc2_ref[...])


# -------------------------------- wrapper ---------------------------------

def mobile_scene_forward(x_u8, p):
    N, C, H, W = x_u8.shape
    Hp, Wp = H + 2, W + 2          # SAME (pad=1) spatial grid
    P = Hp * Wp
    E = Wp + 1                     # max |flat 3x3 tap shift|
    C1 = p["w_stem"].shape[-1]
    C2 = p["w_pw"].shape[-1]
    H1 = p["w_fc1"].shape[-1]
    OUT = p["w_fc2"].shape[-1]
    OUT_PAD = ((OUT + 127) // 128) * 128

    # ---- layout prep (uint8 image + tiny constants; no f32 image in HBM) ----
    x_pad = jnp.pad(x_u8, ((0, 0), (0, 0), (1, 1), (1, 1)))            # zero pad
    x_ext = jnp.pad(x_pad.reshape(N, C, P),
                    ((0, 0), (0, 0), (2 * E, 2 * E)))                  # (N, C, P+4E)

    hh = jnp.arange(Hp)
    ww = jnp.arange(Wp)
    interior = ((hh[:, None] >= 1) & (hh[:, None] <= H) &
                (ww[None, :] >= 1) & (ww[None, :] <= W)
                ).astype(jnp.float32).reshape(1, P)                    # (1, P)
    inv_std = 1.0 / p["std"]
    scale_ext = jnp.pad((inv_std / 255.0)[:, None] * interior,
                        ((0, 0), (2 * E, 2 * E)))                      # (C, P+4E)
    offset_ext = jnp.pad((-p["mean"] * inv_std)[:, None] * interior,
                         ((0, 0), (2 * E, 2 * E)))                     # (C, P+4E)
    mask_e = jnp.pad(interior, ((0, 0), (E, E)))                       # (1, P+2E)
    pool_row = interior / float(H * W)                                 # (1, P)

    # weights re-laid-out for channels-on-sublanes / spatial-on-lanes
    w_stem_t = jnp.transpose(p["w_stem"], (0, 1, 3, 2)).reshape(9, C1, C)
    w_stem_t = w_stem_t.astype(jnp.bfloat16)
    b_stem_c = p["b_stem"].reshape(C1, 1)
    w_dw_t = jnp.transpose(p["w_dw"], (0, 1, 3, 2)).reshape(9, C1, 1)
    b_dw_c = p["b_dw"].reshape(C1, 1)
    w_pw_t = jnp.transpose(p["w_pw"]).astype(jnp.bfloat16)             # (C2, C1)
    b_pw_c = p["b_pw"].reshape(C2, 1)
    b_fc1_r = p["b_fc1"].reshape(1, H1)
    w_fc2_pad = jnp.zeros((H1, OUT_PAD), jnp.float32).at[:, :OUT].set(p["w_fc2"])
    b_fc2_pad = jnp.zeros((1, OUT_PAD), jnp.float32).at[0, :OUT].set(p["b_fc2"])

    taps = tuple((ki - 1) * Wp + (kj - 1) for ki in range(3) for kj in range(3))
    kernel = functools.partial(fused_scene_kernel, taps=taps, ext=E)

    P4 = P + 4 * E
    P2 = P + 2 * E
    const = lambda n: (0, 0)
    const3 = lambda n: (0, 0, 0)

    out = pl.pallas_call(
        kernel,
        out_shape=jax.ShapeDtypeStruct((N, 1, OUT_PAD), jnp.float32),
        grid=(N,),
        in_specs=[
            pl.BlockSpec((1, C, P4), lambda n: (n, 0, 0)),   # uint8 image
            pl.BlockSpec((C, P4), const),                    # scale   (resident)
            pl.BlockSpec((C, P4), const),                    # offset  (resident)
            pl.BlockSpec((1, P2), const),                    # interior mask
            pl.BlockSpec((9, C1, C), const3),                # stem W (bf16)
            pl.BlockSpec((C1, 1), const),                    # stem b
            pl.BlockSpec((9, C1, 1), const3),                # dw W
            pl.BlockSpec((C1, 1), const),                    # dw b
            pl.BlockSpec((C2, C1), const),                   # pw W (bf16)
            pl.BlockSpec((C2, 1), const),                    # pw b
            pl.BlockSpec((1, P), const),                     # pool vector
            pl.BlockSpec((C2, H1), const),                   # fc1 W
            pl.BlockSpec((1, H1), const),                    # fc1 b
            pl.BlockSpec((H1, OUT_PAD), const),              # fc2 W (padded)
            pl.BlockSpec((1, OUT_PAD), const),               # fc2 b (padded)
        ],
        out_specs=pl.BlockSpec((1, 1, OUT_PAD), lambda n: (n, 0, 0)),
        compiler_params=pltpu.CompilerParams(
            dimension_semantics=("parallel",),               # v7x: 2 TCs share batch
            vmem_limit_bytes=32 * 1024 * 1024),
    )(x_ext, scale_ext, offset_ext, mask_e,
      w_stem_t, b_stem_c, w_dw_t, b_dw_c, w_pw_t, b_pw_c, pool_row,
      p["w_fc1"], b_fc1_r, w_fc2_pad, b_fc2_pad)

    return out.reshape(N, OUT_PAD)[:, :OUT]


# ---------------------------- pure-JAX reference ---------------------------

def reference_forward(x_u8, p):
    x = x_u8.astype(jnp.float32) / 255.0
    x = (x - p["mean"][None, :, None, None]) / p["std"][None, :, None, None]
    x = jnp.transpose(x, (0, 2, 3, 1))  # NHWC
    y = jax.lax.conv_general_dilated(
        x, p["w_stem"], (1, 1), "SAME",
        dimension_numbers=("NHWC", "HWIO", "NHWC")) + p["b_stem"]
    y = _hardswish(y)
    y = jax.lax.conv_general_dilated(
        y, p["w_dw"], (1, 1), "SAME",
        dimension_numbers=("NHWC", "HWIO", "NHWC"),
        feature_group_count=p["w_dw"].shape[-1]) + p["b_dw"]
    y = _hardswish(y)
    y = _hardswish(jnp.einsum("nhwc,cd->nhwd", y, p["w_pw"]) + p["b_pw"])
    y = jnp.mean(y, axis=(1, 2))
    h = _hardswish(y @ p["w_fc1"] + p["b_fc1"])
    return h @ p["w_fc2"] + p["b_fc2"]


# --------------------------------- params ----------------------------------

def init_params(key, c_in=3, c_stem=16, c_pw=32, hidden=64, output_length=10):
    ks = jax.random.split(key, 8)
    s = 0.15
    return {
        # torchvision ImageNet normalization used by the MobileNet transforms
        "mean": jnp.array([0.485, 0.456, 0.406], jnp.float32),
        "std": jnp.array([0.229, 0.224, 0.225], jnp.float32),
        "w_stem": s * jax.random.normal(ks[0], (3, 3, c_in, c_stem), jnp.float32),
        "b_stem": s * jax.random.normal(ks[1], (c_stem,), jnp.float32),
        "w_dw": s * jax.random.normal(ks[2], (3, 3, 1, c_stem), jnp.float32),
        "b_dw": s * jax.random.normal(ks[3], (c_stem,), jnp.float32),
        "w_pw": s * jax.random.normal(ks[4], (c_stem, c_pw), jnp.float32),
        "b_pw": s * jax.random.normal(ks[5], (c_pw,), jnp.float32),
        "w_fc1": s * jax.random.normal(ks[6], (c_pw, hidden), jnp.float32),
        "b_fc1": jnp.zeros((hidden,), jnp.float32),
        # replaced final classifier layer: Linear(hidden, output_length)
        "w_fc2": s * jax.random.normal(ks[7], (hidden, output_length), jnp.float32),
        "b_fc2": jnp.zeros((output_length,), jnp.float32),
    }


if __name__ == "__main__":
    key = jax.random.PRNGKey(0)
    k_x, k_p = jax.random.split(key)
    N, C, H, W = 2, 3, 16, 16
    output_length = 10

    x = jax.random.randint(k_x, (N, C, H, W), 0, 256, dtype=jnp.int32).astype(jnp.uint8)
    params = init_params(k_p, c_in=C, output_length=output_length)

    logits = jax.jit(mobile_scene_forward)(x, params)
    logits = jax.block_until_ready(logits)

    ref = reference_forward(x, params)
    assert logits.shape == (N, output_length)
    # bf16 MXU inputs (f32 accumulate) vs. the all-f32 reference -> slightly
    # looser tolerance than exact-f32 would need.
    assert jnp.allclose(logits, ref, rtol=2e-2, atol=2e-2), (logits, ref)

    print("KERNEL_OK")
</pallas_src>

<mosaic_0001>
module attributes {stable_mosaic.version = 11 : i64} {
  func.func @fused_scene_kernel(%arg0: i32, %arg1: memref<1x3x400xi8, #tpu.memory_space<vmem>>, %arg2: memref<3x400xf32, #tpu.memory_space<vmem>>, %arg3: memref<3x400xf32, #tpu.memory_space<vmem>>, %arg4: memref<1x362xf32, #tpu.memory_space<vmem>>, %arg5: memref<9x16x3xbf16, #tpu.memory_space<vmem>>, %arg6: memref<16x1xf32, #tpu.memory_space<vmem>>, %arg7: memref<9x16x1xf32, #tpu.memory_space<vmem>>, %arg8: memref<16x1xf32, #tpu.memory_space<vmem>>, %arg9: memref<32x16xbf16, #tpu.memory_space<vmem>>, %arg10: memref<32x1xf32, #tpu.memory_space<vmem>>, %arg11: memref<1x324xf32, #tpu.memory_space<vmem>>, %arg12: memref<32x64xf32, #tpu.memory_space<vmem>>, %arg13: memref<1x64xf32, #tpu.memory_space<vmem>>, %arg14: memref<64x128xf32, #tpu.memory_space<vmem>>, %arg15: memref<1x128xf32, #tpu.memory_space<vmem>>, %arg16: memref<1x1x128xf32, #tpu.memory_space<vmem>>) attributes {dimension_semantics = [#tpu.dimension_semantics<parallel>], iteration_bounds = array<i64: 2>, scalar_prefetch = 0 : i64, scratch_operands = 0 : i64, tpu.core_type = #tpu.core_type<tc>, window_params = [{transform_indices = @transform_0, window_bounds = array<i64: 1, 3, 400>}, {pipeline_mode = #tpu.pipeline_mode<synchronous>, transform_indices = @transform_1, window_bounds = array<i64: 3, 400>}, {pipeline_mode = #tpu.pipeline_mode<synchronous>, transform_indices = @transform_2, window_bounds = array<i64: 3, 400>}, {pipeline_mode = #tpu.pipeline_mode<synchronous>, transform_indices = @transform_3, window_bounds = array<i64: 1, 362>}, {pipeline_mode = #tpu.pipeline_mode<synchronous>, transform_indices = @transform_4, window_bounds = array<i64: 9, 16, 3>}, {pipeline_mode = #tpu.pipeline_mode<synchronous>, transform_indices = @transform_5, window_bounds = array<i64: 16, 1>}, {pipeline_mode = #tpu.pipeline_mode<synchronous>, transform_indices = @transform_6, window_bounds = array<i64: 9, 16, 1>}, {pipeline_mode = #tpu.pipeline_mode<synchronous>, transform_indices = @transform_7, window_bounds = array<i64: 16, 1>}, {pipeline_mode = #tpu.pipeline_mode<synchronous>, transform_indices = @transform_8, window_bounds = array<i64: 32, 16>}, {pipeline_mode = #tpu.pipeline_mode<synchronous>, transform_indices = @transform_9, window_bounds = array<i64: 32, 1>}, {pipeline_mode = #tpu.pipeline_mode<synchronous>, transform_indices = @transform_10, window_bounds = array<i64: 1, 324>}, {pipeline_mode = #tpu.pipeline_mode<synchronous>, transform_indices = @transform_11, window_bounds = array<i64: 32, 64>}, {pipeline_mode = #tpu.pipeline_mode<synchronous>, transform_indices = @transform_12, window_bounds = array<i64: 1, 64>}, {pipeline_mode = #tpu.pipeline_mode<synchronous>, transform_indices = @transform_13, window_bounds = array<i64: 64, 128>}, {pipeline_mode = #tpu.pipeline_mode<synchronous>, transform_indices = @transform_14, window_bounds = array<i64: 1, 128>}, {transform_indices = @transform_15, window_bounds = array<i64: 1, 1, 128>}]} {
    %c0 = arith.constant 0 : index
    %c0_0 = arith.constant 0 : index
    %c0_1 = arith.constant 0 : index
    %0 = vector.load %arg1[%c0, %c0_0, %c0_1] : memref<1x3x400xi8, #tpu.memory_space<vmem>>, vector<1x3x400xi8>
    %1 = vector.shape_cast %0 : vector<1x3x400xi8> to vector<3x400xi8>
    %2 = arith.extui %1 : vector<3x400xi8> to vector<3x400xi32>
    %3 = arith.sitofp %2 : vector<3x400xi32> to vector<3x400xf32>
    %c0_2 = arith.constant 0 : index
    %c0_3 = arith.constant 0 : index
    %4 = vector.load %arg2[%c0_2, %c0_3] : memref<3x400xf32, #tpu.memory_space<vmem>>, vector<3x400xf32>
    %5 = arith.mulf %3, %4 : vector<3x400xf32>
    %c0_4 = arith.constant 0 : index
    %c0_5 = arith.constant 0 : index
    %6 = vector.load %arg3[%c0_4, %c0_5] : memref<3x400xf32, #tpu.memory_space<vmem>>, vector<3x400xf32>
    %7 = arith.addf %5, %6 : vector<3x400xf32>
    %8 = arith.truncf %7 : vector<3x400xf32> to vector<3x400xbf16>
    %9 = vector.extract_strided_slice %8 {offsets = [0, 0], sizes = [3, 362], strides = [1, 1]} : vector<3x400xbf16> to vector<3x362xbf16>
    %c0_6 = arith.constant 0 : index
    %c0_7 = arith.constant 0 : index
    %c0_8 = arith.constant 0 : index
    %10 = vector.load %arg5[%c0_6, %c0_7, %c0_8] : memref<9x16x3xbf16, #tpu.memory_space<vmem>>, vector<1x16x3xbf16>
    %11 = vector.shape_cast %10 : vector<1x16x3xbf16> to vector<16x3xbf16>
    %cst = arith.constant dense<0.000000e+00> : vector<16x362xf32>
    %12 = tpu.matmul %11, %9, %cst {dimension_numbers = #tpu.dot_dimension_numbers<[1], [0], [0], [1], [0, 0, 1, 1], [], []>} : vector<16x3xbf16>, vector<3x362xbf16>, vector<16x362xf32> -> vector<16x362xf32>
    %13 = vector.extract_strided_slice %8 {offsets = [0, 1], sizes = [3, 362], strides = [1, 1]} : vector<3x400xbf16> to vector<3x362xbf16>
    %c1 = arith.constant 1 : index
    %c0_9 = arith.constant 0 : index
    %c0_10 = arith.constant 0 : index
    %14 = vector.load %arg5[%c1, %c0_9, %c0_10] : memref<9x16x3xbf16, #tpu.memory_space<vmem>>, vector<1x16x3xbf16>
    %15 = vector.shape_cast %14 : vector<1x16x3xbf16> to vector<16x3xbf16>
    %cst_11 = arith.constant dense<0.000000e+00> : vector<16x362xf32>
    %16 = tpu.matmul %15, %13, %cst_11 {dimension_numbers = #tpu.dot_dimension_numbers<[1], [0], [0], [1], [0, 0, 1, 1], [], []>} : vector<16x3xbf16>, vector<3x362xbf16>, vector<16x362xf32> -> vector<16x362xf32>
    %17 = arith.addf %12, %16 : vector<16x362xf32>
    %18 = vector.extract_strided_slice %8 {offsets = [0, 2], sizes = [3, 362], strides = [1, 1]} : vector<3x400xbf16> to vector<3x362xbf16>
    %c2 = arith.constant 2 : index
    %c0_12 = arith.constant 0 : index
    %c0_13 = arith.constant 0 : index
    %19 = vector.load %arg5[%c2, %c0_12, %c0_13] : memref<9x16x3xbf16, #tpu.memory_space<vmem>>, vector<1x16x3xbf16>
    %20 = vector.shape_cast %19 : vector<1x16x3xbf16> to vector<16x3xbf16>
    %cst_14 = arith.constant dense<0.000000e+00> : vector<16x362xf32>
    %21 = tpu.matmul %20, %18, %cst_14 {dimension_numbers = #tpu.dot_dimension_numbers<[1], [0], [0], [1], [0, 0, 1, 1], [], []>} : vector<16x3xbf16>, vector<3x362xbf16>, vector<16x362xf32> -> vector<16x362xf32>
    %22 = arith.addf %17, %21 : vector<16x362xf32>
    %23 = vector.extract_strided_slice %8 {offsets = [0, 18], sizes = [3, 362], strides = [1, 1]} : vector<3x400xbf16> to vector<3x362xbf16>
    %c3 = arith.constant 3 : index
    %c0_15 = arith.constant 0 : index
    %c0_16 = arith.constant 0 : index
    %24 = vector.load %arg5[%c3, %c0_15, %c0_16] : memref<9x16x3xbf16, #tpu.memory_space<vmem>>, vector<1x16x3xbf16>
    %25 = vector.shape_cast %24 : vector<1x16x3xbf16> to vector<16x3xbf16>
    %cst_17 = arith.constant dense<0.000000e+00> : vector<16x362xf32>
    %26 = tpu.matmul %25, %23, %cst_17 {dimension_numbers = #tpu.dot_dimension_numbers<[1], [0], [0], [1], [0, 0, 1, 1], [], []>} : vector<16x3xbf16>, vector<3x362xbf16>, vector<16x362xf32> -> vector<16x362xf32>
    %27 = arith.addf %22, %26 : vector<16x362xf32>
    %28 = vector.extract_strided_slice %8 {offsets = [0, 19], sizes = [3, 362], strides = [1, 1]} : vector<3x400xbf16> to vector<3x362xbf16>
    %c4 = arith.constant 4 : index
    %c0_18 = arith.constant 0 : index
    %c0_19 = arith.constant 0 : index
    %29 = vector.load %arg5[%c4, %c0_18, %c0_19] : memref<9x16x3xbf16, #tpu.memory_space<vmem>>, vector<1x16x3xbf16>
    %30 = vector.shape_cast %29 : vector<1x16x3xbf16> to vector<16x3xbf16>
    %cst_20 = arith.constant dense<0.000000e+00> : vector<16x362xf32>
    %31 = tpu.matmul %30, %28, %cst_20 {dimension_numbers = #tpu.dot_dimension_numbers<[1], [0], [0], [1], [0, 0, 1, 1], [], []>} : vector<16x3xbf16>, vector<3x362xbf16>, vector<16x362xf32> -> vector<16x362xf32>
    %32 = arith.addf %27, %31 : vector<16x362xf32>
    %33 = vector.extract_strided_slice %8 {offsets = [0, 20], sizes = [3, 362], strides = [1, 1]} : vector<3x400xbf16> to vector<3x362xbf16>
    %c5 = arith.constant 5 : index
    %c0_21 = arith.constant 0 : index
    %c0_22 = arith.constant 0 : index
    %34 = vector.load %arg5[%c5, %c0_21, %c0_22] : memref<9x16x3xbf16, #tpu.memory_space<vmem>>, vector<1x16x3xbf16>
    %35 = vector.shape_cast %34 : vector<1x16x3xbf16> to vector<16x3xbf16>
    %cst_23 = arith.constant dense<0.000000e+00> : vector<16x362xf32>
    %36 = tpu.matmul %35, %33, %cst_23 {dimension_numbers = #tpu.dot_dimension_numbers<[1], [0], [0], [1], [0, 0, 1, 1], [], []>} : vector<16x3xbf16>, vector<3x362xbf16>, vector<16x362xf32> -> vector<16x362xf32>
    %37 = arith.addf %32, %36 : vector<16x362xf32>
    %38 = vector.extract_strided_slice %8 {offsets = [0, 36], sizes = [3, 362], strides = [1, 1]} : vector<3x400xbf16> to vector<3x362xbf16>
    %c6 = arith.constant 6 : index
    %c0_24 = arith.constant 0 : index
    %c0_25 = arith.constant 0 : index
    %39 = vector.load %arg5[%c6, %c0_24, %c0_25] : memref<9x16x3xbf16, #tpu.memory_space<vmem>>, vector<1x16x3xbf16>
    %40 = vector.shape_cast %39 : vector<1x16x3xbf16> to vector<16x3xbf16>
    %cst_26 = arith.constant dense<0.000000e+00> : vector<16x362xf32>
    %41 = tpu.matmul %40, %38, %cst_26 {dimension_numbers = #tpu.dot_dimension_numbers<[1], [0], [0], [1], [0, 0, 1, 1], [], []>} : vector<16x3xbf16>, vector<3x362xbf16>, vector<16x362xf32> -> vector<16x362xf32>
    %42 = arith.addf %37, %41 : vector<16x362xf32>
    %43 = vector.extract_strided_slice %8 {offsets = [0, 37], sizes = [3, 362], strides = [1, 1]} : vector<3x400xbf16> to vector<3x362xbf16>
    %c7 = arith.constant 7 : index
    %c0_27 = arith.constant 0 : index
    %c0_28 = arith.constant 0 : index
    %44 = vector.load %arg5[%c7, %c0_27, %c0_28] : memref<9x16x3xbf16, #tpu.memory_space<vmem>>, vector<1x16x3xbf16>
    %45 = vector.shape_cast %44 : vector<1x16x3xbf16> to vector<16x3xbf16>
    %cst_29 = arith.constant dense<0.000000e+00> : vector<16x362xf32>
    %46 = tpu.matmul %45, %43, %cst_29 {dimension_numbers = #tpu.dot_dimension_numbers<[1], [0], [0], [1], [0, 0, 1, 1], [], []>} : vector<16x3xbf16>, vector<3x362xbf16>, vector<16x362xf32> -> vector<16x362xf32>
    %47 = arith.addf %42, %46 : vector<16x362xf32>
    %48 = vector.extract_strided_slice %8 {offsets = [0, 38], sizes = [3, 362], strides = [1, 1]} : vector<3x400xbf16> to vector<3x362xbf16>
    %c8 = arith.constant 8 : index
    %c0_30 = arith.constant 0 : index
    %c0_31 = arith.constant 0 : index
    %49 = vector.load %arg5[%c8, %c0_30, %c0_31] : memref<9x16x3xbf16, #tpu.memory_space<vmem>>, vector<1x16x3xbf16>
    %50 = vector.shape_cast %49 : vector<1x16x3xbf16> to vector<16x3xbf16>
    %cst_32 = arith.constant dense<0.000000e+00> : vector<16x362xf32>
    %51 = tpu.matmul %50, %48, %cst_32 {dimension_numbers = #tpu.dot_dimension_numbers<[1], [0], [0], [1], [0, 0, 1, 1], [], []>} : vector<16x3xbf16>, vector<3x362xbf16>, vector<16x362xf32> -> vector<16x362xf32>
    %52 = arith.addf %47, %51 : vector<16x362xf32>
    %c0_33 = arith.constant 0 : index
    %c0_34 = arith.constant 0 : index
    %53 = vector.load %arg6[%c0_33, %c0_34] : memref<16x1xf32, #tpu.memory_space<vmem>>, vector<16x1xf32>
    %54 = vector.broadcast %53 : vector<16x1xf32> to vector<16x362xf32>
    %55 = arith.addf %52, %54 : vector<16x362xf32>
    %cst_35 = arith.constant 3.000000e+00 : f32
    %56 = vector.broadcast %cst_35 : f32 to vector<16x362xf32>
    %57 = arith.addf %55, %56 : vector<16x362xf32>
    %cst_36 = arith.constant 0.000000e+00 : f32
    %cst_37 = arith.constant 6.000000e+00 : f32
    %58 = vector.broadcast %cst_36 : f32 to vector<16x362xf32>
    %59 = arith.maximumf %58, %57 : vector<16x362xf32>
    %60 = vector.broadcast %cst_37 : f32 to vector<16x362xf32>
    %61 = arith.minimumf %60, %59 : vector<16x362xf32>
    %62 = arith.mulf %55, %61 : vector<16x362xf32>
    %cst_38 = arith.constant 0.166666672 : f32
    %63 = vector.broadcast %cst_38 : f32 to vector<16x362xf32>
    %64 = arith.mulf %62, %63 : vector<16x362xf32>
    %c0_39 = arith.constant 0 : index
    %c0_40 = arith.constant 0 : index
    %65 = vector.load %arg4[%c0_39, %c0_40] : memref<1x362xf32, #tpu.memory_space<vmem>>, vector<1x362xf32>
    %66 = vector.broadcast %65 : vector<1x362xf32> to vector<16x362xf32>
    %67 = arith.mulf %64, %66 : vector<16x362xf32>
    %68 = vector.extract_strided_slice %67 {offsets = [0, 0], sizes = [16, 324], strides = [1, 1]} : vector<16x362xf32> to vector<16x324xf32>
    %c0_41 = arith.constant 0 : index
    %c0_42 = arith.constant 0 : index
    %c0_43 = arith.constant 0 : index
    %69 = vector.load %arg7[%c0_41, %c0_42, %c0_43] : memref<9x16x1xf32, #tpu.memory_space<vmem>>, vector<1x16x1xf32>
    %70 = vector.shape_cast %69 : vector<1x16x1xf32> to vector<16x1xf32>
    %71 = vector.broadcast %70 : vector<16x1xf32> to vector<16x324xf32>
    %72 = arith.mulf %68, %71 : vector<16x324xf32>
    %73 = vector.extract_strided_slice %67 {offsets = [0, 1], sizes = [16, 324], strides = [1, 1]} : vector<16x362xf32> to vector<16x324xf32>
    %c1_44 = arith.constant 1 : index
    %c0_45 = arith.constant 0 : index
    %c0_46 = arith.constant 0 : index
    %74 = vector.load %arg7[%c1_44, %c0_45, %c0_46] : memref<9x16x1xf32, #tpu.memory_space<vmem>>, vector<1x16x1xf32>
    %75 = vector.shape_cast %74 : vector<1x16x1xf32> to vector<16x1xf32>
    %76 = vector.broadcast %75 : vector<16x1xf32> to vector<16x324xf32>
    %77 = arith.mulf %73, %76 : vector<16x324xf32>
    %78 = arith.addf %72, %77 : vector<16x324xf32>
    %79 = vector.extract_strided_slice %67 {offsets = [0, 2], sizes = [16, 324], strides = [1, 1]} : vector<16x362xf32> to vector<16x324xf32>
    %c2_47 = arith.constant 2 : index
    %c0_48 = arith.constant 0 : index
    %c0_49 = arith.constant 0 : index
    %80 = vector.load %arg7[%c2_47, %c0_48, %c0_49] : memref<9x16x1xf32, #tpu.memory_space<vmem>>, vector<1x16x1xf32>
    %81 = vector.shape_cast %80 : vector<1x16x1xf32> to vector<16x1xf32>
    %82 = vector.broadcast %81 : vector<16x1xf32> to vector<16x324xf32>
    %83 = arith.mulf %79, %82 : vector<16x324xf32>
    %84 = arith.addf %78, %83 : vector<16x324xf32>
    %85 = vector.extract_strided_slice %67 {offsets = [0, 18], sizes = [16, 324], strides = [1, 1]} : vector<16x362xf32> to vector<16x324xf32>
    %c3_50 = arith.constant 3 : index
    %c0_51 = arith.constant 0 : index
    %c0_52 = arith.constant 0 : index
    %86 = vector.load %arg7[%c3_50, %c0_51, %c0_52] : memref<9x16x1xf32, #tpu.memory_space<vmem>>, vector<1x16x1xf32>
    %87 = vector.shape_cast %86 : vector<1x16x1xf32> to vector<16x1xf32>
    %88 = vector.broadcast %87 : vector<16x1xf32> to vector<16x324xf32>
    %89 = arith.mulf %85, %88 : vector<16x324xf32>
    %90 = arith.addf %84, %89 : vector<16x324xf32>
    %91 = vector.extract_strided_slice %67 {offsets = [0, 19], sizes = [16, 324], strides = [1, 1]} : vector<16x362xf32> to vector<16x324xf32>
    %c4_53 = arith.constant 4 : index
    %c0_54 = arith.constant 0 : index
    %c0_55 = arith.constant 0 : index
    %92 = vector.load %arg7[%c4_53, %c0_54, %c0_55] : memref<9x16x1xf32, #tpu.memory_space<vmem>>, vector<1x16x1xf32>
    %93 = vector.shape_cast %92 : vector<1x16x1xf32> to vector<16x1xf32>
    %94 = vector.broadcast %93 : vector<16x1xf32> to vector<16x324xf32>
    %95 = arith.mulf %91, %94 : vector<16x324xf32>
    %96 = arith.addf %90, %95 : vector<16x324xf32>
    %97 = vector.extract_strided_slice %67 {offsets = [0, 20], sizes = [16, 324], strides = [1, 1]} : vector<16x362xf32> to vector<16x324xf32>
    %c5_56 = arith.constant 5 : index
    %c0_57 = arith.constant 0 : index
    %c0_58 = arith.constant 0 : index
    %98 = vector.load %arg7[%c5_56, %c0_57, %c0_58] : memref<9x16x1xf32, #tpu.memory_space<vmem>>, vector<1x16x1xf32>
    %99 = vector.shape_cast %98 : vector<1x16x1xf32> to vector<16x1xf32>
    %100 = vector.broadcast %99 : vector<16x1xf32> to vector<16x324xf32>
    %101 = arith.mulf %97, %100 : vector<16x324xf32>
    %102 = arith.addf %96, %101 : vector<16x324xf32>
    %103 = vector.extract_strided_slice %67 {offsets = [0, 36], sizes = [16, 324], strides = [1, 1]} : vector<16x362xf32> to vector<16x324xf32>
    %c6_59 = arith.constant 6 : index
    %c0_60 = arith.constant 0 : index
    %c0_61 = arith.constant 0 : index
    %104 = vector.load %arg7[%c6_59, %c0_60, %c0_61] : memref<9x16x1xf32, #tpu.memory_space<vmem>>, vector<1x16x1xf32>
    %105 = vector.shape_cast %104 : vector<1x16x1xf32> to vector<16x1xf32>
    %106 = vector.broadcast %105 : vector<16x1xf32> to vector<16x324xf32>
    %107 = arith.mulf %103, %106 : vector<16x324xf32>
    %108 = arith.addf %102, %107 : vector<16x324xf32>
    %109 = vector.extract_strided_slice %67 {offsets = [0, 37], sizes = [16, 324], strides = [1, 1]} : vector<16x362xf32> to vector<16x324xf32>
    %c7_62 = arith.constant 7 : index
    %c0_63 = arith.constant 0 : index
    %c0_64 = arith.constant 0 : index
    %110 = vector.load %arg7[%c7_62, %c0_63, %c0_64] : memref<9x16x1xf32, #tpu.memory_space<vmem>>, vector<1x16x1xf32>
    %111 = vector.shape_cast %110 : vector<1x16x1xf32> to vector<16x1xf32>
    %112 = vector.broadcast %111 : vector<16x1xf32> to vector<16x324xf32>
    %113 = arith.mulf %109, %112 : vector<16x324xf32>
    %114 = arith.addf %108, %113 : vector<16x324xf32>
    %115 = vector.extract_strided_slice %67 {offsets = [0, 38], sizes = [16, 324], strides = [1, 1]} : vector<16x362xf32> to vector<16x324xf32>
    %c8_65 = arith.constant 8 : index
    %c0_66 = arith.constant 0 : index
    %c0_67 = arith.constant 0 : index
    %116 = vector.load %arg7[%c8_65, %c0_66, %c0_67] : memref<9x16x1xf32, #tpu.memory_space<vmem>>, vector<1x16x1xf32>
    %117 = vector.shape_cast %116 : vector<1x16x1xf32> to vector<16x1xf32>
    %118 = vector.broadcast %117 : vector<16x1xf32> to vector<16x324xf32>
    %119 = arith.mulf %115, %118 : vector<16x324xf32>
    %120 = arith.addf %114, %119 : vector<16x324xf32>
    %c0_68 = arith.constant 0 : index
    %c0_69 = arith.constant 0 : index
    %121 = vector.load %arg8[%c0_68, %c0_69] : memref<16x1xf32, #tpu.memory_space<vmem>>, vector<16x1xf32>
    %122 = vector.broadcast %121 : vector<16x1xf32> to vector<16x324xf32>
    %123 = arith.addf %120, %122 : vector<16x324xf32>
    %cst_70 = arith.constant 3.000000e+00 : f32
    %124 = vector.broadcast %cst_70 : f32 to vector<16x324xf32>
    %125 = arith.addf %123, %124 : vector<16x324xf32>
    %cst_71 = arith.constant 0.000000e+00 : f32
    %cst_72 = arith.constant 6.000000e+00 : f32
    %126 = vector.broadcast %cst_71 : f32 to vector<16x324xf32>
    %127 = arith.maximumf %126, %125 : vector<16x324xf32>
    %128 = vector.broadcast %cst_72 : f32 to vector<16x324xf32>
    %129 = arith.minimumf %128, %127 : vector<16x324xf32>
    %130 = arith.mulf %123, %129 : vector<16x324xf32>
    %cst_73 = arith.constant 0.166666672 : f32
    %131 = vector.broadcast %cst_73 : f32 to vector<16x324xf32>
    %132 = arith.mulf %130, %131 : vector<16x324xf32>
    %c0_74 = arith.constant 0 : index
    %c0_75 = arith.constant 0 : index
    %133 = vector.load %arg9[%c0_74, %c0_75] : memref<32x16xbf16, #tpu.memory_space<vmem>>, vector<32x16xbf16>
    %134 = arith.truncf %132 : vector<16x324xf32> to vector<16x324xbf16>
    %cst_76 = arith.constant dense<0.000000e+00> : vector<32x324xf32>
    %135 = tpu.matmul %133, %134, %cst_76 {dimension_numbers = #tpu.dot_dimension_numbers<[1], [0], [0], [1], [0, 0, 1, 1], [], []>} : vector<32x16xbf16>, vector<16x324xbf16>, vector<32x324xf32> -> vector<32x324xf32>
    %c0_77 = arith.constant 0 : index
    %c0_78 = arith.constant 0 : index
    %136 = vector.load %arg10[%c0_77, %c0_78] : memref<32x1xf32, #tpu.memory_space<vmem>>, vector<32x1xf32>
    %137 = vector.broadcast %136 : vector<32x1xf32> to vector<32x324xf32>
    %138 = arith.addf %135, %137 : vector<32x324xf32>
    %cst_79 = arith.constant 3.000000e+00 : f32
    %139 = vector.broadcast %cst_79 : f32 to vector<32x324xf32>
    %140 = arith.addf %138, %139 : vector<32x324xf32>
    %cst_80 = arith.constant 0.000000e+00 : f32
    %cst_81 = arith.constant 6.000000e+00 : f32
    %141 = vector.broadcast %cst_80 : f32 to vector<32x324xf32>
    %142 = arith.maximumf %141, %140 : vector<32x324xf32>
    %143 = vector.broadcast %cst_81 : f32 to vector<32x324xf32>
    %144 = arith.minimumf %143, %142 : vector<32x324xf32>
    %145 = arith.mulf %138, %144 : vector<32x324xf32>
    %cst_82 = arith.constant 0.166666672 : f32
    %146 = vector.broadcast %cst_82 : f32 to vector<32x324xf32>
    %147 = arith.mulf %145, %146 : vector<32x324xf32>
    %c0_83 = arith.constant 0 : index
    %c0_84 = arith.constant 0 : index
    %148 = vector.load %arg11[%c0_83, %c0_84] : memref<1x324xf32, #tpu.memory_space<vmem>>, vector<1x324xf32>
    %149 = tpu.transpose %147, [1, 0] : vector<32x324xf32> -> vector<324x32xf32>
    %cst_85 = arith.constant dense<0.000000e+00> : vector<1x32xf32>
    %150 = tpu.matmul %148, %149, %cst_85 {dimension_numbers = #tpu.dot_dimension_numbers<[1], [0], [0], [1], [0, 0, 1, 1], [], []>} : vector<1x324xf32>, vector<324x32xf32>, vector<1x32xf32> -> vector<1x32xf32>
    %c0_86 = arith.constant 0 : index
    %c0_87 = arith.constant 0 : index
    %151 = vector.load %arg12[%c0_86, %c0_87] : memref<32x64xf32, #tpu.memory_space<vmem>>, vector<32x64xf32>
    %cst_88 = arith.constant dense<0.000000e+00> : vector<1x64xf32>
    %152 = tpu.matmul %150, %151, %cst_88 {dimension_numbers = #tpu.dot_dimension_numbers<[1], [0], [0], [1], [0, 0, 1, 1], [], []>} : vector<1x32xf32>, vector<32x64xf32>, vector<1x64xf32> -> vector<1x64xf32>
    %c0_89 = arith.constant 0 : index
    %c0_90 = arith.constant 0 : index
    %153 = vector.load %arg13[%c0_89, %c0_90] : memref<1x64xf32, #tpu.memory_space<vmem>>, vector<1x64xf32>
    %154 = arith.addf %152, %153 : vector<1x64xf32>
    %cst_91 = arith.constant 3.000000e+00 : f32
    %155 = vector.broadcast %cst_91 : f32 to vector<1x64xf32>
    %156 = arith.addf %154, %155 : vector<1x64xf32>
    %cst_92 = arith.constant 0.000000e+00 : f32
    %cst_93 = arith.constant 6.000000e+00 : f32
    %157 = vector.broadcast %cst_92 : f32 to vector<1x64xf32>
    %158 = arith.maximumf %157, %156 : vector<1x64xf32>
    %159 = vector.broadcast %cst_93 : f32 to vector<1x64xf32>
    %160 = arith.minimumf %159, %158 : vector<1x64xf32>
    %161 = arith.mulf %154, %160 : vector<1x64xf32>
    %cst_94 = arith.constant 0.166666672 : f32
    %162 = vector.broadcast %cst_94 : f32 to vector<1x64xf32>
    %163 = arith.mulf %161, %162 : vector<1x64xf32>
    %c0_95 = arith.constant 0 : index
    %c0_96 = arith.constant 0 : index
    %164 = vector.load %arg14[%c0_95, %c0_96] : memref<64x128xf32, #tpu.memory_space<vmem>>, vector<64x128xf32>
    %cst_97 = arith.constant dense<0.000000e+00> : vector<1x128xf32>
    %165 = tpu.matmul %163, %164, %cst_97 {dimension_numbers = #tpu.dot_dimension_numbers<[1], [0], [0], [1], [0, 0, 1, 1], [], []>} : vector<1x64xf32>, vector<64x128xf32>, vector<1x128xf32> -> vector<1x128xf32>
    %c0_98 = arith.constant 0 : index
    %c0_99 = arith.constant 0 : index
    %166 = vector.load %arg15[%c0_98, %c0_99] : memref<1x128xf32, #tpu.memory_space<vmem>>, vector<1x128xf32>
    %167 = arith.addf %165, %166 : vector<1x128xf32>
    %c0_100 = arith.constant 0 : index
    %c0_101 = arith.constant 0 : index
    %c0_102 = arith.constant 0 : index
    %168 = vector.load %arg16[%c0_100, %c0_101, %c0_102] : memref<1x1x128xf32, #tpu.memory_space<vmem>>, vector<1x1x128xf32>
    %169 = vector.shape_cast %168 : vector<1x1x128xf32> to vector<1x128xf32>
    %170 = vector.shape_cast %167 : vector<1x128xf32> to vector<1x1x128xf32>
    tpu.vector_store %arg16[%c0_100, %c0_101, %c0_102], %170 {strides = array<i32>} : memref<1x1x128xf32, #tpu.memory_space<vmem>>, vector<1x1x128xf32>,
    return
  }
  func.func @transform_0(%arg0: i32) -> (i32, i32, i32) {
    %c0_i32 = arith.constant 0 : i32
    %c0_i32_0 = arith.constant 0 : i32
    %c0_i32_1 = arith.constant 0 : i32
    return %arg0, %c0_i32, %c0_i32_0 : i32, i32, i32
  }
  func.func @transform_1(%arg0: i32) -> (i32, i32) {
    %c0_i32 = arith.constant 0 : i32
    %c0_i32_0 = arith.constant 0 : i32
    %c0_i32_1 = arith.constant 0 : i32
    return %c0_i32, %c0_i32_0 : i32, i32
  }
  func.func @transform_2(%arg0: i32) -> (i32, i32) {
    %c0_i32 = arith.constant 0 : i32
    %c0_i32_0 = arith.constant 0 : i32
    %c0_i32_1 = arith.constant 0 : i32
    return %c0_i32, %c0_i32_0 : i32, i32
  }
  func.func @transform_3(%arg0: i32) -> (i32, i32) {
    %c0_i32 = arith.constant 0 : i32
    %c0_i32_0 = arith.constant 0 : i32
    %c0_i32_1 = arith.constant 0 : i32
    return %c0_i32, %c0_i32_0 : i32, i32
  }
  func.func @transform_4(%arg0: i32) -> (i32, i32, i32) {
    %c0_i32 = arith.constant 0 : i32
    %c0_i32_0 = arith.constant 0 : i32
    %c0_i32_1 = arith.constant 0 : i32
    %c0_i32_2 = arith.constant 0 : i32
    return %c0_i32, %c0_i32_0, %c0_i32_1 : i32, i32, i32
  }
  func.func @transform_5(%arg0: i32) -> (i32, i32) {
    %c0_i32 = arith.constant 0 : i32
    %c0_i32_0 = arith.constant 0 : i32
    %c0_i32_1 = arith.constant 0 : i32
    return %c0_i32, %c0_i32_0 : i32, i32
  }
  func.func @transform_6(%arg0: i32) -> (i32, i32, i32) {
    %c0_i32 = arith.constant 0 : i32
    %c0_i32_0 = arith.constant 0 : i32
    %c0_i32_1 = arith.constant 0 : i32
    %c0_i32_2 = arith.constant 0 : i32
    return %c0_i32, %c0_i32_0, %c0_i32_1 : i32, i32, i32
  }
  func.func @transform_7(%arg0: i32) -> (i32, i32) {
    %c0_i32 = arith.constant 0 : i32
    %c0_i32_0 = arith.constant 0 : i32
    %c0_i32_1 = arith.constant 0 : i32
    return %c0_i32, %c0_i32_0 : i32, i32
  }
  func.func @transform_8(%arg0: i32) -> (i32, i32) {
    %c0_i32 = arith.constant 0 : i32
    %c0_i32_0 = arith.constant 0 : i32
    %c0_i32_1 = arith.constant 0 : i32
    return %c0_i32, %c0_i32_0 : i32, i32
  }
  func.func @transform_9(%arg0: i32) -> (i32, i32) {
    %c0_i32 = arith.constant 0 : i32
    %c0_i32_0 = arith.constant 0 : i32
    %c0_i32_1 = arith.constant 0 : i32
    return %c0_i32, %c0_i32_0 : i32, i32
  }
  func.func @transform_10(%arg0: i32) -> (i32, i32) {
    %c0_i32 = arith.constant 0 : i32
    %c0_i32_0 = arith.constant 0 : i32
    %c0_i32_1 = arith.constant 0 : i32
    return %c0_i32, %c0_i32_0 : i32, i32
  }
  func.func @transform_11(%arg0: i32) -> (i32, i32) {
    %c0_i32 = arith.constant 0 : i32
    %c0_i32_0 = arith.constant 0 : i32
    %c0_i32_1 = arith.constant 0 : i32
    return %c0_i32, %c0_i32_0 : i32, i32
  }
  func.func @transform_12(%arg0: i32) -> (i32, i32) {
    %c0_i32 = arith.constant 0 : i32
    %c0_i32_0 = arith.constant 0 : i32
    %c0_i32_1 = arith.constant 0 : i32
    return %c0_i32, %c0_i32_0 : i32, i32
  }
  func.func @transform_13(%arg0: i32) -> (i32, i32) {
    %c0_i32 = arith.constant 0 : i32
    %c0_i32_0 = arith.constant 0 : i32
    %c0_i32_1 = arith.constant 0 : i32
    return %c0_i32, %c0_i32_0 : i32, i32
  }
  func.func @transform_14(%arg0: i32) -> (i32, i32) {
    %c0_i32 = arith.constant 0 : i32
    %c0_i32_0 = arith.constant 0 : i32
    %c0_i32_1 = arith.constant 0 : i32
    return %c0_i32, %c0_i32_0 : i32, i32
  }
  func.func @transform_15(%arg0: i32) -> (i32, i32, i32) {
    %c0_i32 = arith.constant 0 : i32
    %c0_i32_0 = arith.constant 0 : i32
    %c0_i32_1 = arith.constant 0 : i32
    return %arg0, %c0_i32, %c0_i32_0 : i32, i32, i32
  }
}

</mosaic_0001>

<bundles_post_ra>
// kernel: mobile_scene_forward.1
= control target key start
LH: loop header
LB: loop body
LE: loop exit
PB: predicated region body
PF: predicated region fallthrough
CT: control target
= control target key end

     0   :  { %s4113_s0 = inlined_call_operand.vmem [shape: u8[2,3,400], index: 0, kind: input, shape index: {}]   ;;  %s4114_s1 = inlined_call_operand.vmem [shape: f32[3,400], index: 1, kind: input, shape index: {}]   ;;  %s4115_s2 = inlined_call_operand.vmem [shape: f32[3,400], index: 2, kind: input, shape index: {}]   ;;  %s4116_s3 = inlined_call_operand.vmem [shape: f32[1,362], index: 3, kind: input, shape index: {}]   ;;  %s4117_s4 = inlined_call_operand.vmem [shape: bf16[9,16,3], index: 4, kind: input, shape index: {}]   ;;  %s4118_s5 = inlined_call_operand.vmem [shape: f32[16,1], index: 5, kind: input, shape index: {}]   ;;  %s4119_s6 = inlined_call_operand.vmem [shape: f32[9,16,1], index: 6, kind: input, shape index: {}]   ;;  %s4120_s7 = inlined_call_operand.vmem [shape: f32[16,1], index: 7, kind: input, shape index: {}]   ;;  %s4121_s8 = inlined_call_operand.vmem [shape: bf16[32,16], index: 8, kind: input, shape index: {}]   ;;  %s4122_s9 = inlined_call_operand.vmem [shape: f32[32,1], index: 9, kind: input, shape index: {}]   ;;  %s4123_s10 = inlined_call_operand.vmem [shape: f32[1,324], index: 10, kind: input, shape index: {}]   ;;  %s4124_s11 = inlined_call_operand.vmem [shape: f32[32,64], index: 11, kind: input, shape index: {}]   ;;  %s4125_s12 = inlined_call_operand.vmem [shape: f32[1,64], index: 12, kind: input, shape index: {}]   ;;  %s4126_s13 = inlined_call_operand.vmem [shape: f32[64,128], index: 13, kind: input, shape index: {}]   ;;  %s4127_s14 = inlined_call_operand.vmem [shape: f32[1,128], index: 14, kind: input, shape index: {}]   ;;  %s4128_s15 = inlined_call_operand.hbm [shape: f32[2,1,128], index: 15, kind: output, shape index: {}]  }
   0x1   :  { %4148 = sst [smem:[#allocation10_spill]] %s4113_s0 }
   0x2   :  { %20 = vsyncpa [#allocation3], 0 }
   0x3   :  { %22 = vsyncpa [#allocation3 + $0x1], 0  ;;  %s3280_s18 = smov 0   ;;  %s3282_s19 = smov 0  }
   0x4   :  { %s3284_s20 = smov 0   ;;  %s3286_s21 = smov 0  }
   0x5 LB: > { %4149 = sst [smem:[#allocation5_spill]] %s3172_s18  ;;  %s3301_s22 = sadd.s32 4294967295, %s3184_s21   ;;  %s3184_s21 = sphi %s3286_s21, %s4166_s21   ;;  %s3180_s20 = sphi %s3284_s20, %s4168_s20   ;;  %s3176_s19 = sphi %s3282_s19, %s4170_s19   ;;  %s3172_s18 = sphi %s3280_s18, %s4169_s18  }
   0x6   : > { %4150 = sst [smem:[#allocation6_spill]] %s3180_s20  ;;  %s2768_s23 = sadd.s32 4294967294, %s3184_s21  }
   0x7   : > { %s3305_s24 = sadd.s32 1, %s3184_s21   ;;  %s355_s25 = sadd.s32 1, %s3180_s20 }
   0x8   : > { %4151 = sst [smem:[#allocation7_spill]] %s3305_s24  ;;  %s352_s26 = ssub.s32 %s3184_s21, %s3305_s24 }
   0x9   : > { %p365_p0 = scmp.ne.s32.totalorder %s3180_s20, %s3176_s19  ;;  %p353_p1 = scmp.eq.s32.totalorder %s352_s26, 0 }
   0xa   : > { %p366_p2 = scmp.eq.s32.totalorder %s3301_s22, 1  ;;  %p371_p3 = scmp.ne.s32.totalorder %s3176_s19, %s3172_s18 }
   0xb   : > { %p372_p4 = scmp.eq.s32.totalorder %s2768_s23, 1  ;;  %p2771_p7 = scmp.ge.s32.totalorder %s3184_s21, 1 }
   0xc   : > { %s3316_s27 = scalar_select %p353_p1, %s3180_s20, %s355_s25  }
   0xd   : > { %p3318_p5 = por %p366_p2, %p365_p0  ;;  %p3322_p6 = por %p372_p4, %p371_p3 }
   0xe   : > { %4152 = sst [smem:[#allocation8_spill]] %s3316_s27  ;;  %p439_p8 = scmp.lt.s32.totalorder %s3184_s21, 3 }
   0xf   : > { %s4154_s29 = scalar_select %p3322_p6, 1, 0 }
  0x10   : > { %p440_p9 = pnand %p2771_p7, %p439_p8 }
  0x11   : > { %4155 = sst [smem:[#allocation9_spill]] %s4154_s29  ;;  %p485_p10 = scmp.lt.s32.totalorder (!%p440_p9), %s3301_s22, 1  ;;  %v497_v3 = vld [vmem:[%s4114_s1] sm:$0x77] (!%p440_p9)  ;;  %v498_v4 = vld [vmem:[%s4114_s1 + $0x8] sm:$0x77] (!%p440_p9) }
  0x12   : > { %443 = sbr.rel (%p440_p9) target bundleno = 1646 (0x66e), region = 80  ;;  %s4156_s0 = sld [smem:[#allocation10_spill]] (!%p440_p9)  ;;  %v501_v7 = vld [vmem:[%s4115_s2] sm:$0x77] (!%p440_p9)  ;;  %v3186_v10 = vmov (!%p440_p9), 0.0   ;;  %vm3187_vm0 = vmmov (!%p440_p9), 0  }
  0x13   : > { %2888 = vmatprep.subr.bf16.mxu1 (!%p440_p9), %v3186_v10  ;;  %v502_v13 = vld [vmem:[%s4115_s2 + $0x8] sm:$0x77] (!%p440_p9)  ;;  %2890 = vmatprep.mubr.msk.bf16.mxu1 (!%p440_p9), %vm3187_vm0, %v3186_v10  ;;  %s3188_s18 = smov (!%p440_p9), 127   ;;  %v3189_v19 = vmov (!%p440_p9), 0   ;;  %s4146_s20 = smov (!%p440_p9), 126   ;;  %v1582_v23 = vld [vmem:[%s4118_s5] sm:$0xff] (!%p440_p9) }
  0x14   : > { %586 = vmatprep.mubr.bf16.mxu0 (!%p440_p9), %v3189_v19  ;;  %3109 = vset.pattern.permute.xlu1 (!%p440_p9), %v3189_v19  ;;  %s4142_s24 = smov (!%p440_p9), 110   ;;  %s4140_s29 = smov (!%p440_p9), 109   ;;  %v1583_v24 = vld [vmem:[%s4118_s5 + $0x8] sm:$0xff] (!%p440_p9)  ;;  %v2816_v25 = vld [vmem:[%s4119_s6 + $0x10] sm:$0xff] (!%p440_p9)  ;;  %v2818_v26 = vld [vmem:[%s4119_s6 + $0x20] sm:$0xff] (!%p440_p9)  ;;  %vm541_vm1 = vcmask (!%p440_p9), 1040384  }
  0x15   : > { %3110 = vset.pattern.permute.xlu0 (!%p440_p9), %v3189_v19  ;;  %s4134_s17 = smov (!%p440_p9), 92   ;;  %s4138_s23 = smov (!%p440_p9), 91   ;;  %v2817_v27 = vld [vmem:[%s4119_s6 + $0x18] sm:$0xff] (!%p440_p9)  ;;  %v2820_v28 = vld [vmem:[%s4119_s6 + $0x30] sm:$0xff] (!%p440_p9)  ;;  %v2819_v29 = vld [vmem:[%s4119_s6 + $0x28] sm:$0xff] (!%p440_p9)  ;;  %vm542_vm2 = vcmask (!%p440_p9), 1041408  }
  0x16   : > { %v2822_v30 = vld [vmem:[%s4119_s6 + $0x40] sm:$0xff] (!%p440_p9)  ;;  %v2821_v31 = vld [vmem:[%s4119_s6 + $0x38] sm:$0xff] (!%p440_p9)  ;;  %v2824_v32 = vld [vmem:[%s4119_s6 + $0x50] sm:$0xff] (!%p440_p9)  ;;  %v3197_v37 = vmov (!%p440_p9), 65535   ;;  %vm534_vm3 = vcmask (!%p440_p9), 1039360   ;;  %vm753_vm4 = vcmask (!%p440_p9), 1031168  }
  0x17   : > { %v2823_v34 = vld [vmem:[%s4119_s6 + $0x48] sm:$0xff] (!%p440_p9)  ;;  %v2826_v35 = vld [vmem:[%s4119_s6 + $0x60] sm:$0xff] (!%p440_p9)  ;;  %v543_v38 = vsel (!%p440_p9), %vm541_vm1, 4294967295, %v3197_v37  ;;  %v2825_v40 = vld [vmem:[%s4119_s6 + $0x58] sm:$0xff] (!%p440_p9)  ;;  %vm537_vm5 = vcmask (!%p440_p9), 23552   ;;  %vm872_vm6 = vcmask (!%p440_p9), 900096  }
  0x18   : > { %v2828_v41 = vld [vmem:[%s4119_s6 + $0x70] sm:$0xff] (!%p440_p9)  ;;  %v3450_v43 = vsel (!%p440_p9), %vm542_vm2, %v543_v38, 0  ;;  %v3111_v48 = vld [vmem:[%s4117_s4 + $0x8] sm:$0xff] (!%p440_p9)   ;;  %v2829_v59 = vld [vmem:[%s4119_s6 + $0x78] sm:$0xff] (!%p440_p9)  ;;  %vm991_vm7 = vcmask (!%p440_p9), 891904   ;;  %vm1110_vm8 = vcmask (!%p440_p9), 883712  }
  0x19   : > { %s486_s30 = scalar_select %p485_p10, %s3301_s22, 1  ;;  %v2827_v51 = vld [vmem:[%s4119_s6 + $0x68] sm:$0xff]  ;;  %v2830_v61 = vld [vmem:[%s4119_s6 + $0x80] sm:$0xff]  ;;  %vm1232_vm9 = vcmask 752640   ;;  %vm1354_vm10 = vcmask 744448   ;;  %vm1476_vm11 = vcmask 736256  }
  0x1a   : > { %v3112_v62 = vld [vmem:[%s4117_s4] sm:$0xff]   ;;  %s4163_s26 = smov 90   ;;  %vm2192_vm12 = vcmask 130048   ;;  %vm2377_vm13 = vcmask 556032   ;;  %vm2537_vm15 = vcmask 261120  }
  0x1b   : > { %s2772_s16 = sshll.u32 %s486_s30, 2  ;;  %vm2999_vm14 = vmpackc.low %vm2377_vm13, %vm2377_vm13  ;;  %s483_s30 = sand.u32 1, %s3176_s19  }
  0x1c   : > { %s488_s25 = scalar_lea.vmem %s4156_s0, %s2772_s16  ;;  %s4136_s16 = smov 108  }
  0x1d   : > { %v490_v0 = vld [vmem:[%s488_s25] sm:$0xf]  ;;  %s4144_s25 = smov 90  }
  0x1e   : > { %v491_v1 = vunpack.c.0.s8 %v490_v0  ;;  %v492_v2 = vunpack.c.1.s8 %v490_v0 }
  0x20   : > { %v493_v5 = vand.u32 255, %v491_v1  ;;  %v494_v6 = vand.u32 255, %v492_v2  ;;  %v2831_v1 = vld [vmem:[%s4119_s6 + $0x88] sm:$0xff] }
  0x22   : > { %v495_v8 = vcvt.s32.f32 %v493_v5  ;;  %v496_v9 = vcvt.s32.f32 %v494_v6 }
  0x24   : > { %v499_v11 = vmul.f32 %v497_v3, %v495_v8  ;;  %v500_v12 = vmul.f32 %v498_v4, %v496_v9  ;;  %v1653_v3 = vld [vmem:[%s4119_s6] sm:$0xff] }
  0x26   : > { %v503_v14 = vadd.f32 %v501_v7, %v499_v11  ;;  %v504_v17 = vadd.f32 %v502_v13, %v500_v12  ;;  %v1654_v7 = vld [vmem:[%s4119_s6 + $0x8] sm:$0xff]  ;;  %v2103_v11 = vld [vmem:[%s4120_s7] sm:$0xff]  ;;  %v3113_v12 = vld [vmem:[%s4117_s4 + $0x10] sm:$0xff]  }
  0x28   : > { %v3348_v15 = vpack.c.bf16 %v503_v14, %v503_v14  ;;  %v507_v16 = vcombine.high %v503_v14, %v503_v14  ;;  %v3359_v20 = vpack.c.bf16 %v504_v17, %v504_v17  ;;  %v508_v21 = vcombine.high %v504_v17, %v504_v17  ;;  %v2104_v17 = vld [vmem:[%s4120_s7 + $0x8] sm:$0xff] }
  0x2a   : > { %528 = vrot.lane.b32.xlu1 %v3348_v15, %s3188_s18  ;;  %v3352_v18 = vpack.c.bf16 %v507_v16, %v507_v16  ;;  %v514_v22 = vpack.c.bf16 %v508_v21, %v508_v21  ;;  %v653_v53 = vand.u32 %v3450_v43, %v3359_v20  ;;  %v647_v55 = vand.u32 %v3450_v43, %v3348_v15 }
  0x2c   : > { %530 = vrot.lane.b32.xlu0 %v3352_v18, %s3188_s18  ;;  %v650_v49 = vand.u32 %v3450_v43, %v3352_v18 }
  0x2e   : > { %749 = vrot.lane.b32.xlu1 %v3352_v18, %s4146_s20 }
  0x30   : > { %532 = vrot.lane.b32.xlu0 %v3359_v20, %s3188_s18 }
  0x32   : > { %747 = vrot.lane.b32.xlu1 %v3348_v15, %s4146_s20 }
  0x34   : > { %751 = vrot.lane.b32.xlu0 %v3359_v20, %s4146_s20  ;;  %s4161_s20 = smov 92  }
  0x36   : > { %870 = vrot.lane.b32.xlu1 %v3359_v20, %s4142_s24 }
  0x38   : > { %868 = vrot.lane.b32.xlu0 %v3352_v18, %s4142_s24 }
  0x3a   : > { %987 = vrot.lane.b32.xlu1 %v3352_v18, %s4140_s29 }
  0x3c   : > { %866 = vrot.lane.b32.xlu0 %v3348_v15, %s4142_s24  ;;  %s4159_s24 = smov 109  }
  0x3e   : > { %985 = vrot.lane.b32.xlu1 %v3348_v15, %s4140_s29 }
  0x40   : > { %989 = vrot.lane.b32.xlu0 %v3359_v20, %s4140_s29  ;;  %s4160_s29 = smov 108  }
  0x42   : > { %1108 = vrot.lane.b32.xlu1 %v3359_v20, %s4136_s16 }
  0x44   : > { %1106 = vrot.lane.b32.xlu0 %v3352_v18, %s4136_s16 }
  0x46   : > { %1226 = vrot.lane.b32.xlu1 %v3352_v18, %s4134_s17 }
  0x48   : > { %1104 = vrot.lane.b32.xlu0 %v3348_v15, %s4136_s16  ;;  %s4157_s16 = smov 126  }
  0x4a   : > { %1224 = vrot.lane.b32.xlu1 %v3348_v15, %s4134_s17 }
  0x4c   : > { %1228 = vrot.lane.b32.xlu0 %v3359_v20, %s4134_s17 }
  0x4e   : > { %1348 = vrot.lane.b32.xlu1 %v3352_v18, %s4138_s23 }
  0x50   : > { %1230 = vrot.lane.b32.xlu0 %v514_v22, %s4134_s17 }
  0x52   : > { %1346 = vrot.lane.b32.xlu1 %v3348_v15, %s4138_s23 }
  0x54   : > { %1350 = vrot.lane.b32.xlu0 %v3359_v20, %s4138_s23 }
  0x56   : > { %1470 = vrot.lane.b32.xlu1 %v3352_v18, %s4144_s25 }
  0x58   : > { %1352 = vrot.lane.b32.xlu0 %v514_v22, %s4138_s23  ;;  %s4158_s23 = smov 110  }
  0x5a   : > { %1474 = vrot.lane.b32.xlu1 %v514_v22, %s4144_s25  ;;  %v3114_v22 = vld [vmem:[%s4117_s4 + $0x18] sm:$0xff]  }
  0x5c   : > { %1472 = vrot.lane.b32.xlu0 %v3359_v20, %s4144_s25 }
  0x5e   : > { %1586 = vperm.xlu1 %3109, %v1582_v23  }
  0x60   : > { %1468 = vrot.lane.b32.xlu0 %v3348_v15, %s4144_s25  ;;  %s4162_s25 = smov 91  }
  0x62   : > { %1676 = vperm.xlu1 %3109, %v2816_v25  }
  0x64   : > { %1591 = vperm.xlu0 %3110, %v1583_v24  }
  0x66   : > { %1681 = vperm.xlu1 %3109, %v2817_v27  }
  0x68   : > { %1730 = vperm.xlu0 %3110, %v2818_v26  }
  0x6a   : > { %1735 = vperm.xlu1 %3109, %v2819_v29  }
  0x6c   : > { %1784 = vperm.xlu0 %3110, %v2820_v28  }
  0x6e   : > { %1789 = vperm.xlu1 %3109, %v2821_v31  }
  0x70   : > { %1838 = vperm.xlu0 %3110, %v2822_v30   ;;  %v3115_v30 = vld [vmem:[%s4117_s4 + $0x20] sm:$0xff]  }
  0x72   : > { %1843 = vperm.xlu1 %3109, %v2823_v34  }
  0x74   : > { %1892 = vperm.xlu0 %3110, %v2824_v32  }
  0x76   : > { %1897 = vperm.xlu1 %3109, %v2825_v40   ;;  %v3116_v40 = vld [vmem:[%s4117_s4 + $0x28] sm:$0xff]  }
  0x78   : > { %1946 = vperm.xlu0 %3110, %v2826_v35  }
  0x7a   : > { %1951 = vperm.xlu1 %3109, %v2827_v51  }
  0x7c   : > { %2000 = vperm.xlu0 %3110, %v2828_v41  }
  0x7e   : > { %2005 = vperm.xlu1 %3109, %v2829_v59  }
  0x80   : > { %2054 = vperm.xlu0 %3110, %v2830_v61   ;;  %v3119_v61 = vld [vmem:[%s4117_s4 + $0x40] sm:$0xff]  }
  0x82   : > { %2059 = vperm.xlu1 %3109, %v2831_v1  }
  0x84   : > { %1657 = vperm.xlu0 %3110, %v1653_v3  }
  0x86   : > { %1662 = vperm.xlu1 %3109, %v1654_v7  }
  0x88   : > { %2107 = vperm.xlu0 %3110, %v2103_v11  }
  0x8a   : > { %2112 = vperm.xlu1 %3109, %v2104_v17  }
  0x9c   : > { %v529_v33 = vpop.permute.xlu1 %528 }
  0x9e   : > { %v531_v36 = vpop.permute.xlu0 %530 }
  0x9f   : > { %v535_v44 = vsel %vm534_vm3, %v529_v33, %v531_v36 }
  0xa0   : > { %v750_v39 = vpop.permute.xlu1 %749  ;;  %v546_v52 = vand.u32 %v3450_v43, %v535_v44 }
  0xa2   : > { %v533_v42 = vpop.permute.xlu0 %532 }
  0xa3   : > { %v552_v45 = vand.u32 %v3450_v43, %v533_v42  ;;  %v536_v46 = vsel %vm534_vm3, %v531_v36, %v533_v42 }
  0xa4   : > { %v549_v47 = vand.u32 %v3450_v43, %v536_v46  ;;  %v748_v50 = vpop.permute.xlu1 %747 }
  0xa5   : > { %2889 = vmatpush3.bf16.msra.mxu1 %v552_v45  ;;  %v754_v4 = vsel %vm753_vm4, %v748_v50, %v750_v39 }
  0xa6   : > { %554 = vmatprep.subr.bf16.mxu0 %v549_v47  ;;  %2894 = vmatprep.subr.bf16.mxu1 %v3186_v10  ;;  %v752_v54 = vpop.permute.xlu0 %751  ;;  %v760_v9 = vand.u32 %v754_v4, %v3450_v43  ;;  %v3117_v47 = vld [vmem:[%s4117_s4 + $0x30] sm:$0xff]  }
  0xa7   : > { %555 = vmatpush1.bf16.msra.mxu0 %v546_v52  ;;  %v755_v56 = vsel %vm753_vm4, %v750_v39, %v752_v54  ;;  %v766_v0 = vand.u32 %v752_v54, %v3450_v43 }
  0xa8   : > { %2891 = vmatmul.mubr.msk.bf16.vlgmr.msra.gmra.mrb[0].mxu1 %vm537_vm5, %v3111_v48  ;;  %655 = vmatprep.subr.bf16.mxu0 %v650_v49  ;;  %v763_v57 = vand.u32 %v755_v56, %v3450_v43  ;;  %v871_v58 = vpop.permute.xlu1 %870 }
  0xa9   : > { %2895 = vmatpush3.bf16.msra.mxu1 %v653_v53  ;;  %2896 = vmatprep.mubr.msk.bf16.mxu1 %vm3187_vm0, %v3186_v10  ;;  %v885_v15 = vand.u32 %v871_v58, %v3450_v43 }
  0xaa   : > { %2776 = vmatmul.mubr.msk.bf16.vlgmr.msra.gmra.mrb[0].mxu0 %vm537_vm5, %v3111_v48  ;;  %2900 = vmatprep.subr.bf16.mxu1 %v3186_v10  ;;  %v869_v60 = vpop.permute.xlu0 %868 }
  0xab   : > { %656 = vmatpush1.bf16.msra.mxu0 %v647_v55  ;;  %687 = vmatprep.mubr.bf16.mxu0 %v3189_v19  ;;  %v874_v6 = vsel %vm872_vm6, %v869_v60, %v871_v58  ;;  %v3118_v55 = vld [vmem:[%s4117_s4 + $0x38] sm:$0xff]  }
  0xac   : > { %768 = vmatprep.subr.bf16.mxu0 %v763_v57  ;;  %v3487_v63 = vpop.permute.xlu1 %987  ;;  %v882_v13 = vand.u32 %v874_v6, %v3450_v43 }
  0xae   : > { %v867_v2 = vpop.permute.xlu0 %866 }
  0xaf   : > { %v873_v21 = vsel %vm872_vm6, %v867_v2, %v869_v60 }
  0xb0   : > { %2897 = vmatmul.mubr.msk.bf16.vlgmr.msra.gmra.mrb[4].mxu1 %vm537_vm5, %v3112_v62  ;;  %v986_v5 = vpop.permute.xlu1 %985  ;;  %v879_v26 = vand.u32 %v873_v21, %v3450_v43 }
  0xb1   : > { %2901 = vmatpush3.bf16.msra.mxu1 %v766_v0  ;;  %2902 = vmatprep.mubr.msk.bf16.mxu1 %vm3187_vm0, %v3186_v10  ;;  %v992_v33 = vsel %vm991_vm7, %v986_v5, %v3487_v63 }
  0xb2   : > { %2906 = vmatprep.subr.bf16.mxu1 %v3186_v10  ;;  %v990_v8 = vpop.permute.xlu0 %989  ;;  %v998_v37 = vand.u32 %v992_v33, %v3450_v43 }
  0xb3   : > { %v993_v23 = vsel %vm991_vm7, %v3487_v63, %v990_v8  ;;  %v1004_v24 = vand.u32 %v990_v8, %v3450_v43 }
  0xb4   : > { %v1109_v14 = vpop.permute.xlu1 %1108  ;;  %v1001_v28 = vand.u32 %v993_v23, %v3450_v43 }
  0xb5   : > { %v1123_v31 = vand.u32 %v1109_v14, %v3450_v43 }
  0xb6   : > { %2779 = vmatmul.mubr.msk.bf16.vlgmr.msra.gmra.mrb[0].mxu0 %vm537_vm5, %v3112_v62  ;;  %v1107_v16 = vpop.permute.xlu0 %1106 }
  0xb7   : > { %769 = vmatpush1.bf16.msra.mxu0 %v760_v9  ;;  %800 = vmatprep.mubr.bf16.mxu0 %v3189_v19  ;;  %v1112_v34 = vsel %vm1110_vm8, %v1107_v16, %v1109_v14 }
  0xb8   : > { %2903 = vmatmul.mubr.msk.bf16.vlgmr.msra.gmra.mrb[8].mxu1 %vm537_vm5, %v3113_v12  ;;  %887 = vmatprep.subr.bf16.mxu0 %v882_v13  ;;  %v3522_v18 = vpop.permute.xlu1 %1226  ;;  %v1120_v39 = vand.u32 %v1112_v34, %v3450_v43 }
  0xb9   : > { %2907 = vmatpush3.bf16.msra.mxu1 %v885_v15  ;;  %2908 = vmatprep.mubr.msk.bf16.mxu1 %vm3187_vm0, %v3186_v10 }
  0xba   : > { %2912 = vmatprep.subr.bf16.mxu1 %v3186_v10  ;;  %v1105_v20 = vpop.permute.xlu0 %1104 }
  0xbb   : > { %v1111_v46 = vsel %vm1110_vm8, %v1105_v20, %v1107_v16 }
  0xbc   : > { %v1225_v27 = vpop.permute.xlu1 %1224  ;;  %v1117_v50 = vand.u32 %v1111_v46, %v3450_v43 }
  0xbd   : > { %v1233_v57 = vsel %vm1232_vm9, %v1225_v27, %v3522_v18 }
  0xbe   : > { %v1229_v25 = vpop.permute.xlu0 %1228  ;;  %v1240_v59 = vand.u32 %v1233_v57, %v3450_v43 }
  0xbf   : > { %v1234_v48 = vsel %vm1232_vm9, %v3522_v18, %v1229_v25 }
  0xc0   : > { %2909 = vmatmul.mubr.msk.bf16.vlgmr.msra.gmra.mrb[12].mxu1 %vm537_vm5, %v3114_v22  ;;  %v1349_v32 = vpop.permute.xlu1 %1348  ;;  %v1243_v53 = vand.u32 %v1234_v48, %v3450_v43 }
  0xc1   : > { %2913 = vmatpush3.bf16.msra.mxu1 %v1004_v24  ;;  %2914 = vmatprep.mubr.msk.bf16.mxu1 %vm3187_vm0, %v3186_v10 }
  0xc2   : > { %2784 = vmatmul.mubr.msk.bf16.vlgmr.msra.gmra.mrb[0].mxu0 %vm537_vm5, %v3113_v12  ;;  %2918 = vmatprep.subr.bf16.mxu1 %v3186_v10  ;;  %v1231_v29 = vpop.permute.xlu0 %1230 }
  0xc3   : > { %888 = vmatpush1.bf16.msra.mxu0 %v879_v26  ;;  %919 = vmatprep.mubr.bf16.mxu0 %v3189_v19  ;;  %v1235_v36 = vsel %vm1232_vm9, %v1229_v25, %v1231_v29 }
  0xc4   : > { %1006 = vmatprep.subr.bf16.mxu0 %v1001_v28  ;;  %v1347_v38 = vpop.permute.xlu1 %1346  ;;  %v1246_v41 = vand.u32 %v1235_v36, %v3450_v43 }
  0xc5   : > { %v1355_v62 = vsel %vm1354_vm10, %v1347_v38, %v1349_v32 }
  0xc6   : > { %v1351_v35 = vpop.permute.xlu0 %1350  ;;  %v1362_v0 = vand.u32 %v1355_v62, %v3450_v43 }
  0xc7   : > { %v1356_v58 = vsel %vm1354_vm10, %v1349_v32, %v1351_v35 }
  0xc8   : > { %2915 = vmatmul.mubr.msk.bf16.vlgmr.msra.gmra.mrb[16].mxu1 %vm537_vm5, %v3115_v30  ;;  %v1471_v44 = vpop.permute.xlu1 %1470  ;;  %v1365_v60 = vand.u32 %v1356_v58, %v3450_v43 }
  0xc9   : > { %2919 = vmatpush3.bf16.msra.mxu1 %v1123_v31  ;;  %2920 = vmatprep.mubr.msk.bf16.mxu1 %vm3187_vm0, %v3186_v10 }
  0xca   : > { %2924 = vmatprep.subr.bf16.mxu1 %v3186_v10  ;;  %v1353_v42 = vpop.permute.xlu0 %1352 }
  0xcb   : > { %v1357_v45 = vsel %vm1354_vm10, %v1351_v35, %v1353_v42 }
  0xcc   : > { %v1368_v49 = vand.u32 %v1357_v45, %v3450_v43  ;;  %v1475_v51 = vpop.permute.xlu1 %1474 }
  0xce   : > { %2789 = vmatmul.mubr.msk.bf16.vlgmr.msra.gmra.mrb[0].mxu0 %vm537_vm5, %v3114_v22  ;;  %v1473_v52 = vpop.permute.xlu0 %1472 }
  0xcf   : > { %1007 = vmatpush1.bf16.msra.mxu0 %v998_v37  ;;  %1038 = vmatprep.mubr.bf16.mxu0 %v3189_v19  ;;  %v1479_v54 = vsel %vm1476_vm11, %v1473_v52, %v1475_v51  ;;  %v1478_v63 = vsel %vm1476_vm11, %v1471_v44, %v1473_v52 }
  0xd0   : > { %2921 = vmatmul.mubr.msk.bf16.vlgmr.msra.gmra.mrb[20].mxu1 %vm537_vm5, %v3116_v40  ;;  %1125 = vmatprep.subr.bf16.mxu0 %v1120_v39  ;;  %v1490_v56 = vand.u32 %v1479_v54, %v3450_v43  ;;  %v1487_v1 = vand.u32 %v1478_v63, %v3450_v43 }
  0xd1   : > { %2925 = vmatpush3.bf16.msra.mxu1 %v1246_v41  ;;  %2926 = vmatprep.mubr.msk.bf16.mxu1 %vm3187_vm0, %v3186_v10 }
  0xd2   : > { %2930 = vmatprep.subr.bf16.mxu1 %v3186_v10  ;;  %v1469_v2 = vpop.permute.xlu0 %1468 }
  0xd3   : > { %v1477_v3 = vsel %vm1476_vm11, %v1469_v2, %v1471_v44 }
  0xd4   : > { %v1484_v4 = vand.u32 %v1477_v3, %v3450_v43  ;;  %v3622_v3 = vld [vmem:[%s4116_s3] sm:$0x7] }
  0xd8   : > { %2927 = vmatmul.mubr.msk.bf16.vlgmr.msra.gmra.mrb[24].mxu1 %vm537_vm5, %v3117_v47 }
  0xd9   : > { %2931 = vmatpush3.bf16.msra.mxu1 %v1368_v49  ;;  %2932 = vmatprep.mubr.msk.bf16.mxu1 %vm3187_vm0, %v3186_v10 }
  0xda   : > { %2794 = vmatmul.mubr.msk.bf16.vlgmr.msra.gmra.mrb[0].mxu0 %vm537_vm5, %v3115_v30  ;;  %2936 = vmatprep.subr.bf16.mxu1 %v3186_v10 }
  0xdb   : > { %1126 = vmatpush1.bf16.msra.mxu0 %v1117_v50  ;;  %1157 = vmatprep.mubr.bf16.mxu0 %v3189_v19 }
  0xdc   : > { %1248 = vmatprep.subr.bf16.mxu0 %v1243_v53  ;;  %v1632_v53 = vlaneseq }
  0xdd   : > { %v3611_v57 = vpop.permute.xlu1 %1586 }
  0xe0   : > { %2933 = vmatmul.mubr.msk.bf16.vlgmr.msra.gmra.mrb[28].mxu1 %vm537_vm5, %v3118_v55 }
  0xe1   : > { %2937 = vmatpush3.bf16.msra.mxu1 %v1490_v56  ;;  %2938 = vmatprep.mubr.msk.bf16.mxu1 %vm3187_vm0, %v3186_v10 }
  0xe6   : > { %2799 = vmatmul.mubr.msk.bf16.vlgmr.msra.gmra.mrb[0].mxu0 %vm537_vm5, %v3116_v40 }
  0xe7   : > { %1249 = vmatpush1.bf16.msra.mxu0 %v1240_v59  ;;  %1280 = vmatprep.mubr.bf16.mxu0 %v3189_v19  ;;  %v3613_v59 = vpop.permute.xlu0 %1591 }
  0xe8   : > { %2939 = vmatmul.mubr.msk.bf16.vlgmr.msra.gmra.mrb[32].mxu1 %vm537_vm5, %v3119_v61  ;;  %1370 = vmatprep.subr.bf16.mxu0 %v1365_v60 }
  0xf2   : > { %2804 = vmatmul.mubr.msk.bf16.vlgmr.msra.gmra.mrb[0].mxu0 %vm537_vm5, %v3117_v47 }
  0xf3   : > { %1371 = vmatpush1.bf16.msra.mxu0 %v1362_v0  ;;  %1402 = vmatprep.mubr.bf16.mxu0 %v3189_v19 }
  0xf4   : > { %1492 = vmatprep.subr.bf16.mxu0 %v1487_v1 }
  0xfe   : > { %2809 = vmatmul.mubr.msk.bf16.vlgmr.msra.gmra.mrb[0].mxu0 %vm537_vm5, %v3118_v55 }
  0xff   : > { %1493 = vmatpush1.bf16.msra.mxu0 %v1484_v4  ;;  %1524 = vmatprep.mubr.bf16.mxu0 %v3189_v19  ;;  %v3624_v4 = vpop.permute.xlu0 %1730 }
 0x10a   : > { %2814 = vmatmul.mubr.msk.bf16.vlgmr.msra.gmra.mrb[0].mxu0 %vm537_vm5, %v3119_v61  ;;  %v3616_v61 = vshrl.u32 %v1632_v53, 7 }
 0x10b   : > { %2231 = vmatprep.mubr.bf16.mxu0 %v3189_v19 }
 0x10c   : > { %v1642_v2 = vsub.s32 2, %v3616_v61 }
 0x17b   : > { %v631_v5 = vpop.f32.mrb[0].mxu1 }
 0x17c   : > { %v2892_v6 = vpop.f32.mrb[1].mxu1 }
 0x17d   : > { %v634_v7 = vpop.f32.mrb[2].mxu1 }
 0x17e   : > { %v2893_v8 = vpop.f32.mrb[3].mxu1 }
 0x183   : > { %v732_v9 = vpop.f32.mrb[4].mxu1 }
 0x184   : > { %v733_v11 = vadd.f32 %v732_v9, %v631_v5  ;;  %v2898_v12 = vpop.f32.mrb[5].mxu1  ;;  %v3629_v9 = vpop.permute.xlu0 %1784 }
 0x185   : > { %v735_v13 = vpop.f32.mrb[6].mxu1  ;;  %v3633_v12 = vpop.permute.xlu1 %1676 }
 0x186   : > { %v736_v14 = vadd.f32 %v735_v13, %v634_v7  ;;  %v2899_v15 = vpop.f32.mrb[7].mxu1  ;;  %v1643_v7 = vrot.slane %v3622_v3, %v1642_v2 }
 0x18b   : > { %v845_v43 = vpop.f32.mrb[8].mxu1 }
 0x18c   : > { %v854_v16 = vadd.f32 %v845_v43, %v733_v11  ;;  %v2904_v17 = vpop.f32.mrb[9].mxu1 }
 0x18d   : > { %v848_v18 = vpop.f32.mrb[10].mxu1 }
 0x18e   : > { %v857_v20 = vadd.f32 %v848_v18, %v736_v14  ;;  %v2905_v21 = vpop.f32.mrb[11].mxu1  ;;  %v3638_v14 = vpop.permute.xlu0 %1838 }
 0x192   : > { %v3646_v18 = vpop.permute.xlu0 %1892 }
 0x193   : > { %v964_v22 = vpop.f32.mrb[12].mxu1 }
 0x194   : > { %v973_v23 = vadd.f32 %v964_v22, %v854_v16  ;;  %v2910_v24 = vpop.f32.mrb[13].mxu1 }
 0x195   : > { %v967_v25 = vpop.f32.mrb[14].mxu1 }
 0x196   : > { %v976_v26 = vadd.f32 %v967_v25, %v857_v20  ;;  %v2911_v27 = vpop.f32.mrb[15].mxu1  ;;  %v3652_v22 = vpop.permute.xlu0 %1946 }
 0x19b   : > { %v1083_v28 = vpop.f32.mrb[16].mxu1 }
 0x19c   : > { %v1092_v29 = vadd.f32 %v1083_v28, %v973_v23  ;;  %v2916_v30 = vpop.f32.mrb[17].mxu1 }
 0x19d   : > { %v1086_v31 = vpop.f32.mrb[18].mxu1 }
 0x19e   : > { %v1095_v32 = vadd.f32 %v1086_v31, %v976_v26  ;;  %v2917_v33 = vpop.f32.mrb[19].mxu1  ;;  %v3656_v26 = vpop.permute.xlu1 %1681 }
 0x1a3   : > { %v1202_v34 = vpop.f32.mrb[20].mxu1 }
 0x1a4   : > { %v1211_v35 = vadd.f32 %v1202_v34, %v1092_v29  ;;  %v2922_v36 = vpop.f32.mrb[21].mxu1  ;;  %v3664_v34 = vpop.permute.xlu0 %2000 }
 0x1a5   : > { %v1205_v37 = vpop.f32.mrb[22].mxu1  ;;  %v1634_v36 = vsub.s32 0, %v3616_v61 }
 0x1a6   : > { %v1214_v38 = vadd.f32 %v1205_v37, %v1095_v32  ;;  %v2923_v39 = vpop.f32.mrb[23].mxu1  ;;  %v3668_v37 = vpop.permute.xlu1 %1735 }
 0x1ab   : > { %v1325_v40 = vpop.f32.mrb[24].mxu1 }
 0x1ac   : > { %v1334_v41 = vadd.f32 %v1325_v40, %v1211_v35  ;;  %v2928_v42 = vpop.f32.mrb[25].mxu1 }
 0x1ad   : > { %v1328_v44 = vpop.f32.mrb[26].mxu1  ;;  %v1635_v42 = vrot.slane %v3622_v3, %v1634_v36 }
 0x1ae   : > { %v1337_v45 = vadd.f32 %v1328_v44, %v1214_v38  ;;  %v2929_v46 = vpop.f32.mrb[27].mxu1  ;;  %v3676_v44 = vpop.permute.xlu0 %2054 }
 0x1b3   : > { %v1447_v47 = vpop.f32.mrb[28].mxu1 }
 0x1b4   : > { %v1456_v48 = vadd.f32 %v1447_v47, %v1334_v41  ;;  %v2934_v49 = vpop.f32.mrb[29].mxu1 }
 0x1b5   : > { %v1450_v50 = vpop.f32.mrb[30].mxu1 }
 0x1b6   : > { %v1459_v51 = vadd.f32 %v1450_v50, %v1337_v45  ;;  %v2935_v52 = vpop.f32.mrb[31].mxu1 }
 0x1bb   : > { %v1569_v54 = vpop.f32.mrb[32].mxu1 }
 0x1bc   : > { %v1578_v55 = vadd.f32 %v1569_v54, %v1456_v48  ;;  %v2940_v56 = vpop.f32.mrb[33].mxu1  ;;  %v3682_v48 = vpop.permute.xlu1 %1789 }
 0x1bd   : > { %v1572_v58 = vpop.f32.mrb[34].mxu1 }
 0x1be   : > { %v1596_v60 = vadd.f32 %v3611_v57, %v1578_v55  ;;  %v1581_v62 = vadd.f32 %v1572_v58, %v1459_v51  ;;  %v2941_v63 = vpop.f32.mrb[35].mxu1 }
 0x1c0   : > { %v1602_v0 = vadd.f32 3.0, %v1596_v60  ;;  %v1599_v15 = vadd.f32 %v3613_v59, %v1581_v62  ;;  %v3694_v53 = vpop.permute.xlu1 %1843 }
 0x1c2   : > { %v1608_v1 = vmax.f32 %v1602_v0, 0.0  ;;  %v1605_v16 = vadd.f32 3.0, %v1599_v15 }
 0x1c4   : > { %v1614_v5 = vmin.f32 %v1608_v1, 6.0  ;;  %v1611_v20 = vmax.f32 %v1605_v16, 0.0  ;;  %v3707_v0 = vpop.permute.xlu1 %1897 }
 0x1c6   : > { %v1620_v6 = vmul.f32 %v1614_v5, %v1596_v60  ;;  %v1617_v24 = vmin.f32 %v1611_v20, 6.0 }
 0x1c8   : > { %v1626_v8 = vmul.f32 0.16666667, %v1620_v6  ;;  %v1623_v32 = vmul.f32 %v1617_v24, %v1599_v15  ;;  %v1638_v15 = vsub.s32 1, %v3616_v61  ;;  %v2618_v61 = vld [vmem:[%s4126_s13 + $0x10] sm:$0xff] }
 0x1ca   : > { %v3631_v11 = vmul.f32 %v1643_v7, %v1626_v8  ;;  %v1629_v39 = vmul.f32 0.16666667, %v1623_v32  ;;  %v3717_v8 = vpop.permute.xlu1 %1951 }
 0x1cc   : > { %v1686_v13 = vmul.f32 %v3633_v12, %v3631_v11  ;;  %v1740_v43 = vmul.f32 %v3624_v4, %v3631_v11  ;;  %v1794_v17 = vmul.f32 %v3629_v9, %v3631_v11  ;;  %v1848_v21 = vmul.f32 %v3638_v14, %v3631_v11 }
 0x1cd   : > { %v1902_v23 = vmul.f32 %v3646_v18, %v3631_v11  ;;  %v1956_v33 = vmul.f32 %v3652_v22, %v3631_v11  ;;  %v2010_v40 = vmul.f32 %v3664_v34, %v3631_v11  ;;  %v3678_v46 = vmul.f32 %v1643_v7, %v1629_v39 }
 0x1ce   : > { %1700 = vrot.lane.b32.xlu1 %v1686_v13, %s3188_s18  ;;  %v2064_v47 = vmul.f32 %v3676_v44, %v3631_v11 }
 0x1cf   : > { %v1689_v52 = vmul.f32 %v3656_v26, %v3678_v46  ;;  %v1797_v63 = vmul.f32 %v3682_v48, %v3678_v46  ;;  %v1851_v7 = vmul.f32 %v3694_v53, %v3678_v46  ;;  %v1959_v24 = vmul.f32 %v3717_v8, %v3678_v46 }
 0x1d2   : > { %1754 = vrot.lane.b32.xlu1 %v1740_v43, %s4157_s16 }
 0x1d6   : > { %1808 = vrot.lane.b32.xlu1 %v1794_v17, %s4158_s23  ;;  %v1905_v17 = vmul.f32 %v3707_v0, %v3678_v46 }
 0x1da   : > { %1862 = vrot.lane.b32.xlu1 %v1848_v21, %s4159_s24  ;;  %v1639_v21 = vrot.slane %v3622_v3, %v1638_v15 }
 0x1dd   : > { %v1526_v25 = vpop.f32.mrb[0].mxu0 }
 0x1de   : > { %v1594_v27 = vadd.f32 %v3611_v57, %v1526_v25  ;;  %v1528_v28 = vpop.f32.mrb[1].mxu0  ;;  %1916 = vrot.lane.b32.xlu1 %v1902_v23, %s4160_s29 }
 0x1df   : > { %v1530_v29 = vpop.f32.mrb[2].mxu0  ;;  %v1595_v50 = vadd.f32 %v3611_v57, %v1528_v28  ;;  %v1743_v57 = vmul.f32 %v3668_v37, %v3678_v46 }
 0x1e0   : > { %v1600_v30 = vadd.f32 3.0, %v1594_v27  ;;  %v3660_v31 = vpop.f32.mrb[3].mxu0  ;;  %v1597_v56 = vadd.f32 %v3613_v59, %v1530_v29 }
 0x1e1   : > { %v1601_v54 = vadd.f32 3.0, %v1595_v50  ;;  %v1598_v39 = vadd.f32 %v3613_v59, %v3660_v31 }
 0x1e2   : > { %v1606_v35 = vmax.f32 %v1600_v30, 0.0  ;;  %1970 = vrot.lane.b32.xlu1 %v1956_v33, %s4161_s20  ;;  %v1603_v62 = vadd.f32 3.0, %v1597_v56 }
 0x1e3   : > { %v1607_v58 = vmax.f32 %v1601_v54, 0.0 }
 0x1e4   : > { %v1612_v38 = vmin.f32 %v1606_v35, 6.0  ;;  %v1609_v6 = vmax.f32 %v1603_v62, 0.0  ;;  %v2159_v62 = vld [vmem:[%s4122_s9 + $0x8] sm:$0xff] }
 0x1e5   : > { %v1613_v1 = vmin.f32 %v1607_v58, 6.0 }
 0x1e6   : > { %v1618_v41 = vmul.f32 %v1612_v38, %v1594_v27  ;;  %2024 = vrot.lane.b32.xlu1 %v2010_v40, %s4162_s25  ;;  %v1615_v16 = vmin.f32 %v1609_v6, 6.0  ;;  %v3733_v27 = vpop.permute.xlu1 %2005 }
 0x1e7   : > { %v1619_v13 = vmul.f32 %v1613_v1, %v1595_v50  ;;  %v2013_v3 = vmul.f32 %v3733_v27, %v3678_v46 }
 0x1e8   : > { %v1624_v45 = vmul.f32 0.16666667, %v1618_v41  ;;  %v1621_v25 = vmul.f32 %v1615_v16, %v1597_v56 }
 0x1e9   : > { %v1625_v20 = vmul.f32 0.16666667, %v1619_v13 }
 0x1ea   : > { %v3684_v49 = vmul.f32 %v1635_v42, %v1624_v45  ;;  %2078 = vrot.lane.b32.xlu1 %v2064_v47, %s4163_s26  ;;  %v1627_v30 = vmul.f32 0.16666667, %v1621_v25  ;;  %v3745_v32 = vpop.permute.xlu1 %2059 }
 0x1eb   : > { %v3737_v28 = vmul.f32 %v1639_v21, %v1625_v20  ;;  %v2067_v35 = vmul.f32 %v3745_v32, %v3678_v46 }
 0x1ec   : > { %v1684_v51 = vmul.f32 %v3633_v12, %v3684_v49  ;;  %v1738_v55 = vmul.f32 %v3624_v4, %v3684_v49  ;;  %v1792_v60 = vmul.f32 %v3629_v9, %v3684_v49  ;;  %v1846_v5 = vmul.f32 %v3638_v14, %v3684_v49 }
 0x1ed   : > { %v1900_v43 = vmul.f32 %v3646_v18, %v3684_v49  ;;  %v1954_v23 = vmul.f32 %v3652_v22, %v3684_v49  ;;  %v2008_v29 = vmul.f32 %v3664_v34, %v3684_v49  ;;  %v1685_v33 = vmul.f32 %v3633_v12, %v3737_v28  ;;  %v3766_v12 = vld [vmem:[%s4121_s8] sm:$0xff]  }
 0x1ee   : > { %1696 = vrot.lane.b32.xlu0 %v1684_v51, %s3188_s18  ;;  %1706 = vrot.lane.b32.xlu1 %v1689_v52, %s3188_s18  ;;  %v3751_v38 = vmul.f32 %v1635_v42, %v1627_v30  ;;  %v1739_v40 = vmul.f32 %v3624_v4, %v3737_v28  ;;  %v1604_v42 = vadd.f32 3.0, %v1598_v39  ;;  %v1793_v59 = vmul.f32 %v3629_v9, %v3737_v28  ;;  %v3831_v6 = vpop.permute.xlu1 %1662 }
 0x1ef   : > { %2944 = vmatprep.mubr.msk.bf16.mxu1 %vm2192_vm12, %v3766_v12  ;;  %v1847_v45 = vmul.f32 %v3638_v14, %v3737_v28  ;;  %v1901_v50 = vmul.f32 %v3646_v18, %v3737_v28  ;;  %v1955_v14 = vmul.f32 %v3652_v22, %v3737_v28  ;;  %v2009_v18 = vmul.f32 %v3664_v34, %v3737_v28 }
 0x1f0   : > { %v1687_v41 = vmul.f32 %v3656_v26, %v3751_v38  ;;  %v1741_v4 = vmul.f32 %v3668_v37, %v3751_v38  ;;  %v1610_v31 = vmax.f32 %v1604_v42, 0.0  ;;  %v1795_v47 = vmul.f32 %v3682_v48, %v3751_v38 }
 0x1f1   : > { %v1849_v51 = vmul.f32 %v3694_v53, %v3751_v38  ;;  %v1903_v54 = vmul.f32 %v3707_v0, %v3751_v38  ;;  %v1957_v56 = vmul.f32 %v3717_v8, %v3751_v38  ;;  %v2063_v22 = vmul.f32 %v3676_v44, %v3737_v28 }
 0x1f2   : > { %1750 = vrot.lane.b32.xlu0 %v1738_v55, %s4157_s16  ;;  %1760 = vrot.lane.b32.xlu1 %v1743_v57, %s4157_s16  ;;  %v1616_v9 = vmin.f32 %v1610_v31, 6.0  ;;  %v2011_v58 = vmul.f32 %v3733_v27, %v3751_v38  ;;  %v3836_v13 = vpop.permute.xlu1 %2112 }
 0x1f4   : > { %v1622_v52 = vmul.f32 %v1616_v9, %v1598_v39 }
 0x1f6   : > { %1804 = vrot.lane.b32.xlu0 %v1792_v60, %s4158_s23  ;;  %1814 = vrot.lane.b32.xlu1 %v1797_v63, %s4158_s23  ;;  %v1628_v55 = vmul.f32 0.16666667, %v1622_v52  ;;  %v2065_v60 = vmul.f32 %v3745_v32, %v3751_v38 }
 0x1f8   : > { %v3800_v57 = vmul.f32 %v1639_v21, %v1628_v55  ;;  %v2160_v21 = vld [vmem:[%s4122_s9 + $0x10] sm:$0xff] }
 0x1fa   : > { %1858 = vrot.lane.b32.xlu0 %v1846_v5, %s4159_s24  ;;  %1868 = vrot.lane.b32.xlu1 %v1851_v7, %s4159_s24  ;;  %v1688_v34 = vmul.f32 %v3656_v26, %v3800_v57  ;;  %v1742_v63 = vmul.f32 %v3668_v37, %v3800_v57  ;;  %v2161_v26 = vld [vmem:[%s4122_s9 + $0x18] sm:$0xff]  ;;  %v1796_v1 = vmul.f32 %v3682_v48, %v3800_v57 }
 0x1fb   : > { %v1850_v5 = vmul.f32 %v3694_v53, %v3800_v57  ;;  %v1904_v37 = vmul.f32 %v3707_v0, %v3800_v57  ;;  %v1958_v7 = vmul.f32 %v3717_v8, %v3800_v57  ;;  %v2012_v48 = vmul.f32 %v3733_v27, %v3800_v57 }
 0x1fc   : > { %v2066_v0 = vmul.f32 %v3745_v32, %v3800_v57  ;;  %v2062_v8 = vmul.f32 %v3676_v44, %v3684_v49  ;;  %v1658_v44 = vpop.permute.xlu0 %1657 }
 0x1fd   : > { %v1667_v32 = vmul.f32 %v1658_v44, %v3631_v11  ;;  %v1670_v11 = vmul.f32 %v3831_v6, %v3678_v46 }
 0x1fe   : > { %1912 = vrot.lane.b32.xlu0 %v1900_v43, %s4160_s29  ;;  %1922 = vrot.lane.b32.xlu1 %v1905_v17, %s4160_s29  ;;  %v2158_v17 = vld [vmem:[%s4122_s9] sm:$0xff] }
 0x200   : > { %v3866_v27 = vpop.permute.xlu0 %2107 }
 0x202   : > { %1966 = vrot.lane.b32.xlu0 %v1954_v23, %s4161_s20  ;;  %1976 = vrot.lane.b32.xlu1 %v1959_v24, %s4161_s20 }
 0x206   : > { %2020 = vrot.lane.b32.xlu0 %v2008_v29, %s4162_s25  ;;  %2030 = vrot.lane.b32.xlu1 %v2013_v3, %s4162_s25 }
 0x20a   : > { %1698 = vrot.lane.b32.xlu0 %v1685_v33, %s3188_s18  ;;  %2084 = vrot.lane.b32.xlu1 %v2067_v35, %s4163_s26 }
 0x20e   : > { %1752 = vrot.lane.b32.xlu0 %v1739_v40, %s4157_s16  ;;  %1702 = vrot.lane.b32.xlu1 %v1687_v41, %s3188_s18 }
 0x212   : > { %1806 = vrot.lane.b32.xlu0 %v1793_v59, %s4158_s23  ;;  %1756 = vrot.lane.b32.xlu1 %v1741_v4, %s4157_s16 }
 0x216   : > { %1860 = vrot.lane.b32.xlu0 %v1847_v45, %s4159_s24  ;;  %1810 = vrot.lane.b32.xlu1 %v1795_v47, %s4158_s23 }
 0x21a   : > { %1914 = vrot.lane.b32.xlu0 %v1901_v50, %s4160_s29  ;;  %1864 = vrot.lane.b32.xlu1 %v1849_v51, %s4159_s24 }
 0x21e   : > { %1968 = vrot.lane.b32.xlu0 %v1955_v14, %s4161_s20  ;;  %1918 = vrot.lane.b32.xlu1 %v1903_v54, %s4160_s29 }
 0x222   : > { %2022 = vrot.lane.b32.xlu0 %v2009_v18, %s4162_s25  ;;  %1972 = vrot.lane.b32.xlu1 %v1957_v56, %s4161_s20 }
 0x226   : > { %2076 = vrot.lane.b32.xlu0 %v2063_v22, %s4163_s26  ;;  %2026 = vrot.lane.b32.xlu1 %v2011_v58, %s4162_s25 }
 0x22a   : > { %1704 = vrot.lane.b32.xlu0 %v1688_v34, %s3188_s18  ;;  %2080 = vrot.lane.b32.xlu1 %v2065_v60, %s4163_s26  ;;  %s2845_s18 = sshll.u32 %s3301_s22, 4  ;;  %s3199_s22 = smov [#allocation2]  }
 0x22b   : > { %s3126_s27 = sshll.u32 %s3199_s22, 4  ;;  %s3127_s27 = int_to_ptr.vmem [resolvable:$false] %s3126_s27 }
 0x22c   : > { %s3128_s17 = scalar_lea.vmem %s3127_s27, 32 }
 0x22e   : > { %1758 = vrot.lane.b32.xlu0 %v1742_v63, %s4157_s16  ;;  %2169 = vperm.xlu1 %3109, %v2159_v62   ;;  %s484_s16 = scalar_lea.vmem [#allocation2], %s483_s30 }
 0x232   : > { %1812 = vrot.lane.b32.xlu0 %v1796_v1, %s4158_s23  ;;  %2179 = vperm.xlu1 %3109, %v2161_v26   ;;  %s2713_s23 = sshll.u32 %s484_s16, 4  ;;  %s4073_s23 = int_to_ptr.vmem [resolvable:$true] %s2713_s23 }
 0x233   : > { %p3129_p0 = scmp.lt.s32.totalorder %s4073_s23, %s3127_s27 }
 0x236   : > { %1866 = vrot.lane.b32.xlu0 %v1850_v5, %s4159_s24  ;;  %v1665_v5 = vmul.f32 %v1658_v44, %v3684_v49 }
 0x23a   : > { %1920 = vrot.lane.b32.xlu0 %v1904_v37, %s4160_s29 }
 0x23e   : > { %1974 = vrot.lane.b32.xlu0 %v1958_v7, %s4161_s20  ;;  %v1666_v7 = vmul.f32 %v1658_v44, %v3737_v28  ;;  %s4071_s20 = scalar_lea.hbm %s4128_s15, %s2845_s18 }
 0x240   : > { %v1701_v53 = vpop.permute.xlu1 %1700 }
 0x241   : > { %v1721_v33 = vadd.f32 %v1701_v53, %v1667_v32 }
 0x242   : > { %2028 = vrot.lane.b32.xlu0 %v2012_v48, %s4162_s25  ;;  %s2701_s25 = scalar_lea.sflag [#allocation3], %s483_s30 }
 0x244   : > { %v3844_v43 = vpop.permute.xlu1 %1754 }
 0x245   : > { %v1775_v40 = vadd.f32 %v3844_v43, %v1721_v33 }
 0x246   : > { %2082 = vrot.lane.b32.xlu0 %v2066_v0, %s4163_s26 }
 0x248   : > { %v3849_v16 = vpop.permute.xlu1 %1808 }
 0x249   : > { %v1829_v41 = vadd.f32 %v3849_v16, %v1775_v40 }
 0x24a   : > { %2074 = vrot.lane.b32.xlu0 %v2062_v8, %s4163_s26  ;;  %s3122_s26 = scalar_lea.vmem %s4073_s23, 16 }
 0x24b   : > { %p3123_p11 = scmp.ne.s32.totalorder %s4073_s23, %s3122_s26  ;;  %p3130_p1 = scmp.lt.s32.totalorder %s3128_s17, %s3122_s26 }
 0x24c   : > { %v3855_v20 = vpop.permute.xlu1 %1862 }
 0x24d   : > { %v1883_v4 = vadd.f32 %v3855_v20, %v1829_v41  ;;  %p3124_p12 = pnand %p3123_p11, %p3318_p5  ;;  %p3131_p2 = por %p3130_p1, %p3129_p0 }
 0x24e   : > { %2164 = vperm.xlu0 %3110, %v2158_v17  }
 0x24f   : > { %p3125_p13 = pneg %p3124_p12 }
 0x250   : > { %v3860_v23 = vpop.permute.xlu1 %1916 }
 0x251   : > { %v1937_v31 = vadd.f32 %v3860_v23, %v1883_v4  ;;  %p3132_p3 = pnand %p3131_p2, %p3125_p13 }
 0x252   : > { %2174 = vperm.xlu0 %3110, %v2160_v21  }
 0x254   : > { %v3862_v24 = vpop.permute.xlu1 %1970 }
 0x255   : > { %v1991_v9 = vadd.f32 %v3862_v24, %v1937_v31 }
 0x258   : > { %v3864_v25 = vpop.permute.xlu1 %2024 }
 0x259   : > { %v2045_v50 = vadd.f32 %v3864_v25, %v1991_v9 }
 0x25c   : > { %v3868_v29 = vpop.permute.xlu1 %2078 }
 0x25d   : > { %v2099_v54 = vadd.f32 %v3868_v29, %v2045_v50 }
 0x25f   : > { %v2117_v46 = vadd.f32 %v3866_v27, %v2099_v54 }
 0x260   : > { %v1697_v3 = vpop.permute.xlu0 %1696  ;;  %v3870_v30 = vpop.permute.xlu1 %1706 }
 0x261   : > { %v1724_v51 = vadd.f32 %v3870_v30, %v1670_v11  ;;  %v2123_v63 = vadd.f32 3.0, %v2117_v46 }
 0x263   : > { %v2129_v17 = vmax.f32 %v2123_v63, 0.0 }
 0x264   : > { %v1751_v35 = vpop.permute.xlu0 %1750  ;;  %v3873_v39 = vpop.permute.xlu1 %1760 }
 0x265   : > { %v1778_v55 = vadd.f32 %v3873_v39, %v1724_v51  ;;  %v2135_v28 = vmin.f32 %v2129_v17, 6.0 }
 0x267   : > { %v2141_v51 = vmul.f32 %v2135_v28, %v2117_v46 }
 0x268   : > { %v1805_v42 = vpop.permute.xlu0 %1804  ;;  %v3877_v59 = vpop.permute.xlu1 %1814 }
 0x269   : > { %v1832_v18 = vadd.f32 %v3877_v59, %v1778_v55 }
 0x26c   : > { %v1859_v45 = vpop.permute.xlu0 %1858  ;;  %v3881_v47 = vpop.permute.xlu1 %1868 }
 0x26d   : > { %v1886_v58 = vadd.f32 %v3881_v47, %v1832_v18 }
 0x270   : > { %v1913_v52 = vpop.permute.xlu0 %1912  ;;  %v3888_v14 = vpop.permute.xlu1 %1922 }
 0x271   : > { %v1940_v34 = vadd.f32 %v3888_v14, %v1886_v58 }
 0x274   : > { %v1967_v56 = vpop.permute.xlu0 %1966  ;;  %v3893_v22 = vpop.permute.xlu1 %1976 }
 0x275   : > { %v1994_v26 = vadd.f32 %v3893_v22, %v1940_v34 }
 0x278   : > { %v2021_v60 = vpop.permute.xlu0 %2020  ;;  %v3898_v62 = vpop.permute.xlu1 %2030 }
 0x279   : > { %v2048_v1 = vadd.f32 %v3898_v62, %v1994_v26 }
 0x27c   : > { %v1699_v37 = vpop.permute.xlu0 %1698  ;;  %v3904_v48 = vpop.permute.xlu1 %2084 }
 0x27d   : > { %v1709_v0 = vsel %vm534_vm3, %v1697_v3, %v1699_v37  ;;  %v1710_v8 = vsel %vm534_vm3, %v1699_v37, %v1701_v53  ;;  %v2102_v21 = vadd.f32 %v3904_v48, %v2048_v1  ;;  %v2147_v1 = vmul.f32 0.16666667, %v2141_v51 }
 0x27e   : > { %v1719_v32 = vadd.f32 %v1709_v0, %v1665_v5  ;;  %v1720_v33 = vadd.f32 %v1710_v8, %v1666_v7 }
 0x27f   : > { %v2120_v40 = vadd.f32 %v3836_v13, %v2102_v21 }
 0x280   : > { %v1753_v41 = vpop.permute.xlu0 %1752  ;;  %v1703_v46 = vpop.permute.xlu1 %1702 }
 0x281   : > { %v1763_v4 = vsel %vm753_vm4, %v1751_v35, %v1753_v41  ;;  %v1764_v49 = vsel %vm753_vm4, %v1753_v41, %v3844_v43  ;;  %v2126_v44 = vadd.f32 3.0, %v2120_v40 }
 0x282   : > { %v1773_v31 = vadd.f32 %v1763_v4, %v1719_v32  ;;  %v1774_v11 = vadd.f32 %v1764_v49, %v1720_v33 }
 0x283   : > { %v2132_v3 = vmax.f32 %v2126_v44, 0.0 }
 0x284   : > { %v1807_v9 = vpop.permute.xlu0 %1806 }
 0x285   : > { %v1817_v53 = vsel %vm872_vm6, %v1805_v42, %v1807_v9  ;;  %v1818_v50 = vsel %vm872_vm6, %v1807_v9, %v3849_v16  ;;  %v2138_v54 = vmin.f32 %v2132_v3, 6.0 }
 0x286   : > { %v1827_v55 = vadd.f32 %v1817_v53, %v1773_v31  ;;  %v1828_v18 = vadd.f32 %v1818_v50, %v1774_v11  ;;  %v1669_v11 = vmul.f32 %v3831_v6, %v3800_v57 }
 0x287   : > { %v2144_v58 = vmul.f32 %v2138_v54, %v2120_v40 }
 0x288   : > { %v1861_v35 = vpop.permute.xlu0 %1860 }
 0x289   : > { %v1871_v34 = vsel %vm991_vm7, %v1859_v45, %v1861_v35  ;;  %v1872_v43 = vsel %vm991_vm7, %v1861_v35, %v3855_v20  ;;  %v2150_v5 = vmul.f32 0.16666667, %v2144_v58  ;;  %v3925_v45 = vld [vmem:[%s4121_s8 + $0x8] sm:$0xff]  }
 0x28a   : > { %v1881_v63 = vadd.f32 %v1871_v34, %v1827_v55  ;;  %v1882_v26 = vadd.f32 %v1872_v43, %v1828_v18 }
 0x28b   : > { %v2157_v42 = vpack.c.bf16 %v2150_v5, %v2147_v1 }
 0x28c   : > { %v1915_v37 = vpop.permute.xlu0 %1914 }
 0x28d   : > { %v1925_v7 = vsel %vm1110_vm8, %v1913_v52, %v1915_v37  ;;  %v1926_v16 = vsel %vm1110_vm8, %v1915_v37, %v3860_v23  ;;  %2942 = vmatprep.subr.bf16.mxu1 %v2157_v42  ;;  %v1757_v23 = vpop.permute.xlu1 %1756 }
 0x28e   : > { %v1935_v0 = vadd.f32 %v1925_v7, %v1881_v63  ;;  %v1936_v8 = vadd.f32 %v1926_v16, %v1882_v26  ;;  %2943 = vmatpush3.bf16.msra.mxu1 %v2157_v42 }
 0x290   : > { %v1969_v20 = vpop.permute.xlu0 %1968 }
 0x291   : > { %v1979_v17 = vsel %vm1232_vm9, %v1967_v56, %v1969_v20  ;;  %v1980_v21 = vsel %vm1232_vm9, %v1969_v20, %v3862_v24  ;;  %2945 = vmatmul.mubr.msk.bf16.vlgmr.msra.gmra.mrb[36].mxu1 %vm2192_vm12, %v3925_v45  ;;  %v1811_v28 = vpop.permute.xlu1 %1810 }
 0x292   : > { %v1989_v52 = vadd.f32 %v1979_v17, %v1935_v0  ;;  %v1990_v32 = vadd.f32 %v1980_v21, %v1936_v8  ;;  %2967 = vmatprep.mubr.msk.f32.mxu1 %vm3187_vm0, %v3186_v10 }
 0x294   : > { %v2023_v33 = vpop.permute.xlu0 %2022 }
 0x295   : > { %v2033_v40 = vsel %vm1354_vm10, %v2021_v60, %v2023_v33  ;;  %v2034_v41 = vsel %vm1354_vm10, %v2023_v33, %v3864_v25  ;;  %v1865_v9 = vpop.permute.xlu1 %1864 }
 0x296   : > { %v3937_v4 = vadd.f32 %v2033_v40, %v1989_v52  ;;  %v2044_v56 = vadd.f32 %v2034_v41, %v1990_v32 }
 0x298   : > { %v2077_v49 = vpop.permute.xlu0 %2076 }
 0x299   : > { %v2088_v24 = vsel %vm1476_vm11, %v2077_v49, %v3868_v29  ;;  %v1919_v54 = vpop.permute.xlu1 %1918 }
 0x29a   : > { %v2098_v44 = vadd.f32 %v2088_v24, %v2044_v56 }
 0x29c   : > { %v1705_v31 = vpop.permute.xlu0 %1704 }
 0x29d   : > { %v1712_v3 = vsel %vm534_vm3, %v1705_v31, %v3870_v30  ;;  %v1711_v58 = vsel %vm534_vm3, %v1703_v46, %v1705_v31  ;;  %v1668_v30 = vmul.f32 %v3831_v6, %v3751_v38  ;;  %v2116_v38 = vadd.f32 %v3866_v27, %v2098_v44 }
 0x29e   : > { %v1723_v60 = vadd.f32 %v1712_v3, %v1669_v11 }
 0x29f   : > { %v1722_v43 = vadd.f32 %v1711_v58, %v1668_v30  ;;  %v2122_v21 = vadd.f32 3.0, %v2116_v38 }
 0x2a0   : > { %v1759_v53 = vpop.permute.xlu0 %1758 }
 0x2a1   : > { %v1766_v25 = vsel %vm753_vm4, %v1759_v53, %v3873_v39  ;;  %v1765_v34 = vsel %vm753_vm4, %v1757_v23, %v1759_v53  ;;  %v1973_v39 = vpop.permute.xlu1 %1972 }
 0x2a2   : > { %v1777_v50 = vadd.f32 %v1766_v25, %v1723_v60  ;;  %v1776_v1 = vadd.f32 %v1765_v34, %v1722_v43 }
 0x2a4   : > { %v1813_v51 = vpop.permute.xlu0 %1812 }
 0x2a5   : > { %v1820_v29 = vsel %vm872_vm6, %v1813_v51, %v3877_v59  ;;  %v1819_v26 = vsel %vm872_vm6, %v1811_v28, %v1813_v51  ;;  %v2027_v6 = vpop.permute.xlu1 %2026 }
 0x2a6   : > { %v1831_v55 = vadd.f32 %v1820_v29, %v1777_v50  ;;  %v1830_v42 = vadd.f32 %v1819_v26, %v1776_v1 }
 0x2a8   : > { %v1867_v18 = vpop.permute.xlu0 %1866 }
 0x2a9   : > { %v1874_v57 = vsel %vm991_vm7, %v1867_v18, %v3881_v47  ;;  %v1873_v37 = vsel %vm991_vm7, %v1865_v9, %v1867_v18  ;;  %v2081_v23 = vpop.permute.xlu1 %2080 }
 0x2aa   : > { %v1885_v35 = vadd.f32 %v1874_v57, %v1831_v55  ;;  %v1884_v16 = vadd.f32 %v1873_v37, %v1830_v42 }
 0x2ac   : > { %v1921_v63 = vpop.permute.xlu0 %1920 }
 0x2ad   : > { %v1928_v59 = vsel %vm1110_vm8, %v1921_v63, %v3888_v14  ;;  %v1927_v7 = vsel %vm1110_vm8, %v1919_v54, %v1921_v63  ;;  %v2170_v42 = vpop.permute.xlu1 %2169 }
 0x2ae   : > { %v1939_v5 = vadd.f32 %v1928_v59, %v1885_v35  ;;  %v1938_v8 = vadd.f32 %v1927_v7, %v1884_v16  ;;  %v3198_v59 = vmov 0.0|0.0  }
 0x2af   : > { %3005 = vmatprep.subr.bf16.mxu1 %v3198_v59 }
 0x2b0   : > { %v1975_v47 = vpop.permute.xlu0 %1974 }
 0x2b1   : > { %v1981_v46 = vsel %vm1232_vm9, %v1973_v39, %v1975_v47  ;;  %v1982_v0 = vsel %vm1232_vm9, %v1975_v47, %v3893_v22  ;;  %v2128_v22 = vmax.f32 %v2122_v21, 0.0  ;;  %v2180_v16 = vpop.permute.xlu1 %2179 }
 0x2b2   : > { %v1992_v52 = vadd.f32 %v1981_v46, %v1938_v8  ;;  %v1993_v32 = vadd.f32 %v1982_v0, %v1939_v5 }
 0x2b3   : > { %v2134_v60 = vmin.f32 %v2128_v22, 6.0 }
 0x2b4   : > { %v2029_v20 = vpop.permute.xlu0 %2028 }
 0x2b5   : > { %v2035_v14 = vsel %vm1354_vm10, %v2027_v6, %v2029_v20  ;;  %v2036_v17 = vsel %vm1354_vm10, %v2029_v20, %v3898_v62  ;;  %v2140_v18 = vmul.f32 %v2134_v60, %v2116_v38 }
 0x2b6   : > { %v2046_v33 = vadd.f32 %v2035_v14, %v1992_v52  ;;  %v2047_v40 = vadd.f32 %v2036_v17, %v1993_v32 }
 0x2b7   : > { %v2146_v35 = vmul.f32 0.16666667, %v2140_v18 }
 0x2b8   : > { %v2083_v41 = vpop.permute.xlu0 %2082 }
 0x2b9   : > { %v2089_v56 = vsel %vm1476_vm11, %v2081_v23, %v2083_v41  ;;  %v2090_v24 = vsel %vm1476_vm11, %v2083_v41, %v3904_v48 }
 0x2ba   : > { %v2100_v28 = vadd.f32 %v2089_v56, %v2046_v33  ;;  %v2101_v44 = vadd.f32 %v2090_v24, %v2047_v40 }
 0x2bc   : > { %v2118_v31 = vadd.f32 %v3836_v13, %v2100_v28  ;;  %v2119_v11 = vadd.f32 %v3836_v13, %v2101_v44  ;;  %v2075_v62 = vpop.permute.xlu0 %2074 }
 0x2bd   : > { %v2087_v3 = vsel %vm1476_vm11, %v2075_v62, %v2077_v49 }
 0x2be   : > { %v2124_v9 = vadd.f32 3.0, %v2118_v31  ;;  %v2125_v53 = vadd.f32 3.0, %v2119_v11  ;;  %v2097_v25 = vadd.f32 %v2087_v3, %v3937_v4 }
 0x2c0   : > { %v2130_v50 = vmax.f32 %v2124_v9, 0.0  ;;  %v2131_v51 = vmax.f32 %v2125_v53, 0.0  ;;  %v2115_v29 = vadd.f32 %v3866_v27, %v2097_v25  ;;  %v3983_v27 = vld [vmem:[%s4123_s10] sm:$0x7] }
 0x2c1   : > { %v2370_v26 = vrot.slane %v3983_v27, %v1638_v15  ;;  %v2535_v15 = vld [vmem:[%s4124_s11 + $0x18] sm:$0xff] }
 0x2c2   : > { %v2136_v48 = vmin.f32 %v2130_v50, 6.0  ;;  %v2137_v54 = vmin.f32 %v2131_v51, 6.0  ;;  %v2121_v55 = vadd.f32 3.0, %v2115_v29 }
 0x2c4   : > { %v2127_v58 = vmax.f32 %v2121_v55, 0.0  ;;  %v2143_v57 = vmul.f32 %v2137_v54, %v2119_v11  ;;  %v2142_v30 = vmul.f32 %v2136_v48, %v2118_v31 }
 0x2c6   : > { %v2133_v13 = vmin.f32 %v2127_v58, 6.0  ;;  %v2149_v34 = vmul.f32 0.16666667, %v2143_v57  ;;  %v2148_v43 = vmul.f32 0.16666667, %v2142_v30 }
 0x2c8   : > { %v2139_v49 = vmul.f32 %v2133_v13, %v2115_v29  ;;  %v2156_v39 = vpack.c.bf16 %v2149_v34, %v2146_v35 }
 0x2ca   : > { %v2145_v63 = vmul.f32 0.16666667, %v2139_v49  ;;  %2199 = vmatprep.subr.bf16.mxu0 %v2156_v39 }
 0x2cc   : > { %v2155_v4 = vpack.c.bf16 %v2148_v43, %v2145_v63 }
 0x2cd   : > { %v2165_v37 = vpop.permute.xlu0 %2164 }
 0x2ce   : > { %2200 = vmatpush1.bf16.msra.mxu0 %v2155_v4 }
 0x2d1   : > { %2834 = vmatmul.mubr.msk.bf16.vlgmr.msra.gmra.mrb[4].mxu0 %vm2192_vm12, %v3766_v12  ;;  %v2533_v12 = vld [vmem:[%s4124_s11 + $0x8] sm:$0xff]  ;;  %v2175_v47 = vpop.permute.xlu0 %2174 }
 0x2d2   : > { %2241 = vmatprep.mubr.bf16.mxu0 %v3189_v19  ;;  %v2532_v19 = vld [vmem:[%s4124_s11] sm:$0xff] }
 0x2d3   : > { %v3006_v1 = vpack.c.bf16 %v2533_v12, %v2532_v19 }
 0x2d5   : > { %3007 = vmatpush3.bf16.msra.mxu1 %v3006_v1 }
 0x2d6   : > { %3008 = vmatprep.subr.bf16.mxu1 %v3198_v59 }
 0x2d9   : > { %2835 = vmatmul.mubr.msk.bf16.gmra.mrb[8].mxu0 %vm2192_vm12, %v3925_v45  ;;  %v2534_v45 = vld [vmem:[%s4124_s11 + $0x10] sm:$0xff] }
 0x2da   : > { %2456 = vmatprep.mubr.f32.mxu0 %v2370_v26  ;;  %v3009_v5 = vpack.c.bf16 %v2535_v15, %v2534_v45 }
 0x2dc   : > { %3010 = vmatpush3.bf16.msra.mxu1 %v3009_v5 }
 0x2dd   : > { %3011 = vmatprep.subr.bf16.mxu1 %v3198_v59 }
 0x364   : > { %v2946_v7 = vpop.f32.mrb[36].mxu1 }
 0x365   : > { %v2295_v38 = vadd.f32 %v2946_v7, %v2175_v47  ;;  %v2286_v6 = vpop.f32.mrb[37].mxu1 }
 0x366   : > { %v2287_v46 = vadd.f32 %v2286_v6, %v2165_v37  ;;  %v2947_v0 = vpop.f32.mrb[38].mxu1 }
 0x367   : > { %v2309_v8 = vadd.f32 3.0, %v2295_v38  ;;  %v2298_v20 = vadd.f32 %v2947_v0, %v2180_v16  ;;  %v2289_v14 = vpop.f32.mrb[39].mxu1 }
 0x368   : > { %v2303_v17 = vadd.f32 3.0, %v2287_v46  ;;  %v2290_v21 = vadd.f32 %v2289_v14, %v2170_v42 }
 0x369   : > { %v2321_v52 = vmax.f32 %v2309_v8, 0.0  ;;  %v2312_v32 = vadd.f32 3.0, %v2298_v20 }
 0x36a   : > { %v2315_v23 = vmax.f32 %v2303_v17, 0.0  ;;  %v2306_v33 = vadd.f32 3.0, %v2290_v21 }
 0x36b   : > { %v2333_v40 = vmin.f32 %v2321_v52, 6.0  ;;  %v2324_v41 = vmax.f32 %v2312_v32, 0.0 }
 0x36c   : > { %v2327_v56 = vmin.f32 %v2315_v23, 6.0  ;;  %v2318_v24 = vmax.f32 %v2306_v33, 0.0 }
 0x36d   : > { %v2345_v22 = vmul.f32 %v2333_v40, %v2295_v38  ;;  %v2336_v28 = vmin.f32 %v2324_v41, 6.0 }
 0x36e   : > { %v2339_v44 = vmul.f32 %v2327_v56, %v2287_v46  ;;  %v2330_v31 = vmin.f32 %v2318_v24, 6.0 }
 0x36f   : > { %v2348_v11 = vmul.f32 %v2336_v28, %v2298_v20  ;;  %v4003_v3 = vmul.f32 0.16666667, %v2345_v22 }
 0x370   : > { %v2342_v62 = vmul.f32 %v2330_v31, %v2290_v21  ;;  %v4007_v9 = vmul.f32 0.16666667, %v2339_v44 }
 0x371   : > { %v4005_v60 = vmul.f32 0.16666667, %v2348_v11 }
 0x372   : > { %v4009_v53 = vmul.f32 0.16666667, %v2342_v62 }
 0x373   : > { %v3002_v25 = vpack.c.bf16 %v4005_v60, %v4003_v3  ;;  %v2620_v3 = vld [vmem:[%s4126_s13 + $0x20] sm:$0xff]  ;;  %v2622_v60 = vld [vmem:[%s4126_s13 + $0x30] sm:$0xff] }
 0x374   : > { %v2998_v50 = vpack.c.bf16 %v4009_v53, %v4007_v9  ;;  %v2617_v9 = vld [vmem:[%s4126_s13 + $0x8] sm:$0xff] }
 0x3a4   : > { %v2233_v51 = vpop.f32.mrb[4].mxu0 }
 0x3a5   : > { %v2234_v29 = vadd.f32 %v2233_v51, %v2165_v37  ;;  %v2235_v48 = vpop.f32.mrb[5].mxu0 }
 0x3a6   : > { %v2236_v54 = vadd.f32 %v2235_v48, %v2165_v37  ;;  %v2237_v55 = vpop.f32.mrb[6].mxu0 }
 0x3a7   : > { %v2301_v18 = vadd.f32 3.0, %v2234_v29  ;;  %v2238_v58 = vadd.f32 %v2237_v55, %v2170_v42  ;;  %v2239_v57 = vpop.f32.mrb[7].mxu0 }
 0x3a8   : > { %v2302_v30 = vadd.f32 3.0, %v2236_v54  ;;  %v2240_v13 = vadd.f32 %v2239_v57, %v2170_v42 }
 0x3a9   : > { %v2313_v35 = vmax.f32 %v2301_v18, 0.0  ;;  %v2304_v34 = vadd.f32 3.0, %v2238_v58 }
 0x3aa   : > { %v2314_v49 = vmax.f32 %v2302_v30, 0.0  ;;  %v2305_v39 = vadd.f32 3.0, %v2240_v13  ;;  %v2366_v30 = vrot.slane %v3983_v27, %v1634_v36  ;;  %v2616_v36 = vld [vmem:[%s4126_s13] sm:$0xff] }
 0x3ab   : > { %v2325_v43 = vmin.f32 %v2313_v35, 6.0  ;;  %v2316_v63 = vmax.f32 %v2304_v34, 0.0  ;;  %v3012_v53 = vpack.c.bf16 %v2617_v9, %v2616_v36  ;;  %v2623_v34 = vld [vmem:[%s4126_s13 + $0x38] sm:$0xff] }
 0x3ac   : > { %v2326_v4 = vmin.f32 %v2314_v49, 6.0  ;;  %v2317_v26 = vmax.f32 %v2305_v39, 0.0  ;;  %v2243_v19 = vpop.f32.mrb[8].mxu0  ;;  %v3021_v49 = vpack.c.bf16 %v2623_v34, %v2622_v60  ;;  %v2536_v39 = vld [vmem:[%s4125_s12] sm:$0x1] }
 0x3ad   : > { %v2337_v12 = vmul.f32 %v2325_v43, %v2234_v29  ;;  %v2328_v45 = vmin.f32 %v2316_v63, 6.0  ;;  %v2244_v1 = vadd.f32 %v2243_v19, %v2175_v47  ;;  %v2245_v15 = vpop.f32.mrb[9].mxu0 }
 0x3ae   : > { %v2338_v5 = vmul.f32 %v2326_v4, %v2236_v54  ;;  %v2329_v37 = vmin.f32 %v2317_v26, 6.0  ;;  %v2246_v7 = vadd.f32 %v2245_v15, %v2175_v47  ;;  %v2247_v38 = vpop.f32.mrb[10].mxu0 }
 0x3af   : > { %v2340_v6 = vmul.f32 %v2328_v45, %v2238_v58  ;;  %v2307_v46 = vadd.f32 3.0, %v2244_v1  ;;  %v2248_v42 = vadd.f32 %v2247_v38, %v2180_v16  ;;  %v2249_v0 = vpop.f32.mrb[11].mxu0  ;;  %v2349_v17 = vmul.f32 0.16666667, %v2337_v12 }
 0x3b0   : > { %v2341_v8 = vmul.f32 %v2329_v37, %v2240_v13  ;;  %v2308_v20 = vadd.f32 3.0, %v2246_v7  ;;  %v2250_v14 = vadd.f32 %v2249_v0, %v2180_v16  ;;  %v2350_v23 = vmul.f32 0.16666667, %v2338_v5 }
 0x3b1   : > { %v2352_v21 = vmul.f32 0.16666667, %v2340_v6  ;;  %v2319_v52 = vmax.f32 %v2307_v46, 0.0  ;;  %v2310_v32 = vadd.f32 3.0, %v2248_v42  ;;  %v2374_v13 = vrot.slane %v3983_v27, %v1642_v2  ;;  %v2619_v2 = vld [vmem:[%s4126_s13 + $0x18] sm:$0xff] }
 0x3b2   : > { %v2353_v33 = vmul.f32 0.16666667, %v2341_v8  ;;  %v2320_v40 = vmax.f32 %v2308_v20, 0.0  ;;  %v2311_v41 = vadd.f32 3.0, %v2250_v14  ;;  %v3015_v27 = vpack.c.bf16 %v2619_v2, %v2618_v61 }
 0x3b3   : > { %v2991_v56 = vpack.c.bf16 %v2352_v21, %v2349_v17  ;;  %v2331_v24 = vmin.f32 %v2319_v52, 6.0  ;;  %v2322_v22 = vmax.f32 %v2310_v32, 0.0 }
 0x3b4   : > { %v2332_v47 = vmin.f32 %v2320_v40, 6.0  ;;  %v2323_v28 = vmax.f32 %v2311_v41, 0.0  ;;  %v2989_v44 = vpack.c.bf16 %v2353_v33, %v2350_v23 }
 0x3b5   : > { %v2343_v31 = vmul.f32 %v2331_v24, %v2244_v1  ;;  %v2334_v11 = vmin.f32 %v2322_v22, 6.0 }
 0x3b6   : > { %v2344_v62 = vmul.f32 %v2332_v47, %v2246_v7  ;;  %v2335_v51 = vmin.f32 %v2323_v28, 6.0  ;;  %2990 = vmatprep.subr.bf16.mxu0 %v2989_v44 }
 0x3b7   : > { %v2346_v16 = vmul.f32 %v2334_v11, %v2248_v42  ;;  %2992 = vmatpush1.bf16.xpose.msra.mxu0 %v2991_v56  ;;  %v2355_v48 = vmul.f32 0.16666667, %v2343_v31 }
 0x3b8   : > { %v2347_v29 = vmul.f32 %v2335_v51, %v2250_v14  ;;  %v2356_v55 = vmul.f32 0.16666667, %v2344_v62 }
 0x3b9   : > { %v2358_v54 = vmul.f32 0.16666667, %v2346_v16 }
 0x3ba   : > { %v2359_v18 = vmul.f32 0.16666667, %v2347_v29 }
 0x3bb   : > { %v2995_v58 = vpack.c.bf16 %v2358_v54, %v2355_v48 }
 0x3bc   : > { %v2993_v57 = vpack.c.bf16 %v2359_v18, %v2356_v55 }
 0x3be   : > { %2994 = vmatprep.subr.bf16.mxu0 %v2993_v57 }
 0x3bf   : > { %2996 = vmatpush1.bf16.xpose.msra.mxu0 %v2995_v58 }
 0x3c0   : > { %2997 = vmatprep.subr.bf16.mxu0 %v3198_v59 }
 0x3c6   : > { %2457 = vmatmul.mubr.f32.vlgmr.msra.gmra.mrb[12].mxu0 %v2366_v30 }
 0x3c7   : > { %3000 = vmatpush3.bf16.xpose.msk.msra.mxu0 %vm2999_vm14, %v2998_v50  ;;  %2956 = vmatprep.mubr.msk.f32.mxu0 %vm3187_vm0, %v3186_v10 }
 0x3c8   : > { %3001 = vmatprep.subr.bf16.mxu0 %v3198_v59 }
 0x3cf   : > { %3004 = vmatpush3.bf16.xpose.msk.msra.mxu0 %vm2999_vm14, %v3002_v25 }
 0x3d6   : > { %2957 = vmatmul.mubr.msk.f32.vlgmr.msra.gmra.mrb[12].mxu0 %vm2377_vm13, %v2374_v13 }
 0x4a9   : > { %v2528_v50 = vpop.f32.mrb[12].mxu0 }
 0x4aa   : > { %v2958_v35 = vpop.f32.mrb[13].mxu0  ;;  %2968 = vmatmul.mubr.msk.f32.vlgmr.msra.gmra.mrb[40].mxu1 %vm2537_vm15, %v2528_v50 }
 0x4ab   : > { %3013 = vmatpush3.bf16.msra.mxu1 %v3012_v53  ;;  %2986 = vmatprep.mubr.msk.f32.mxu1 %vm3187_vm0, %v3186_v10  ;;  %v2621_v10 = vld [vmem:[%s4126_s13 + $0x28] sm:$0xff]  ;;  %vm2625_vm0 = vcmask 523264  }
 0x4ac   : > { %3014 = vmatprep.subr.bf16.mxu1 %v3198_v59  ;;  %v3018_v25 = vpack.c.bf16 %v2621_v10, %v2620_v3 }
 0x4af   : > { %3016 = vmatpush3.bf16.msra.mxu1 %v3015_v27 }
 0x4b0   : > { %3017 = vmatprep.subr.bf16.mxu1 %v3198_v59 }
 0x4b3   : > { %3019 = vmatpush3.bf16.msra.mxu1 %v3018_v25 }
 0x4b4   : > { %3020 = vmatprep.subr.bf16.mxu1 %v3198_v59  ;;  %v2624_v59 = vld [vmem:[%s4127_s14] sm:$0x1] }
 0x4b7   : > { %3022 = vmatpush3.bf16.msra.mxu1 %v3021_v49 }
 0x57d   : > { %v2607_v43 = vpop.f32.mrb[40].mxu1 }
 0x57e   : > { %v2608_v63 = vadd.f32 %v2607_v43, %v2536_v39  ;;  %v2969_v4 = vpop.f32.mrb[41].mxu1 }
 0x580   : > { %v2611_v26 = vadd.f32 3.0, %v2608_v63 }
 0x582   : > { %v2612_v19 = vmax.f32 %v2611_v26, 0.0 }
 0x584   : > { %v2613_v12 = vmin.f32 %v2612_v19, 6.0 }
 0x586   : > { %v2614_v45 = vmul.f32 %v2613_v12, %v2608_v63 }
 0x588   : > { %v2615_v1 = vmul.f32 0.16666667, %v2614_v45 }
 0x58a   : > { %2987 = vmatmul.mubr.msk.f32.vlgmr.msra.gmra.mrb[42].mxu1 %vm2625_vm0, %v2615_v1 }
 0x65d   : > { %v2695_v15 = vpop.f32.mrb[42].mxu1 }
 0x65e   : > { %v2696_v5 = vadd.f32 %v2695_v15, %v2624_v59  ;;  %v2988_v37 = vpop.f32.mrb[43].mxu1 }
 0x660   : > { %2699 = vst [vmem:[%s484_s16] sm:$0x1] %v2696_v5 }
 0x661   : > { %3135 = shalt.err (!%p3132_p3)
}
 0x662   : > { %s3136_s30 = scalar_lea.hbm %s4071_s20, 16  ;;  %s3140_s16 = scalar_lea.hbm %s4128_s15, 32 }
 0x663   : > { %p3137_p4 = scmp.ne.s32.totalorder %s4071_s20, %s3136_s30  ;;  %p3141_p9 = scmp.lt.u32.totalorder %s4071_s20, %s4128_s15 }
 0x664   : > { %p3142_p10 = scmp.lt.u32.totalorder %s3140_s16, %s3136_s30  ;;  %p3144_p12 = scmp.lt.u32.totalorder %s3136_s30, %s4071_s20 }
 0x665   : > { %p3138_p7 = pnand %p3137_p4, %p3318_p5 }
 0x666   : > { %p3143_p11 = por %p3142_p10, %p3141_p9 }
 0x667   : > { %p3139_p8 = pneg %p3138_p7 }
 0x668   : > { %p3145_p13 = por %p3144_p12, %p3143_p11 }
 0x66a   : > { %p3146_p0 = pnand %p3145_p13, %p3139_p8 }
 0x66c   : > { %3149 = shalt.err (!%p3146_p0)
}
 0x66d   : > { %3057 = dma.vmem_to_hbm [thread:$0]  (%p3318_p5), %s4073_s23, 16, %s4071_s20, %s2701_s25  }
 0x66e PF: > { %s4164_s26 = sld [smem:[#allocation5_spill]]  ;;  %p3063_p1 = scmp.ge.s32.totalorder %s3184_s21, 2 }
 0x670   : > { %p3060_p2 = pnand %p3063_p1, %p3322_p6 }
 0x674   : > { %s2725_s27 = sand.u32 1, %s4164_s26  }
 0x675   : > { %s2726_s17 = scalar_lea.sflag [#allocation3], %s2725_s27 }
 0x676   : > { %3167 = dma.done.wait (!%p3060_p2), %s2726_s17, 16  }
 0x677   : > { %3169 = vsyncadd (!%p3060_p2), %s2726_s17, 4294967280  ;;  %s4166_s21 = sld [smem:[#allocation7_spill]]  ;;  %s4167_s30 = sld [smem:[#allocation6_spill]] }
 0x678   : > { %s4168_s20 = sld [smem:[#allocation8_spill]]  ;;  %s4169_s18 = smov %s3176_s19 }
 0x67d   : > { %p25_p3 = scmp.ge.s32.totalorder %s4166_s21, 4   ;;  %s4170_s19 = smov %s4167_s30 }
 0x67f   :  { %27 = sbr.rel (!%p25_p3) target bundleno = 5 (0x5), region = 131 }
 0x686   :  { %2730 = vsyncpa [#allocation3], 1 }
 0x687   :  { %2732 = vsyncpa [#allocation3 + $0x1], 1 }

</bundles_post_ra>
